<compile_context>
chip_gen: v6e
topology: v6e:2x2x1
jax: 0.10.0
libtpu: 0.0.40
codegen_flags: <defaults>
</compile_context>

<pallas_src>
import math

import jax
import jax.numpy as jnp
from jax.experimental import pallas as pl
from jax.experimental.pallas import tpu as pltpu

# ------------------------- config -------------------------
B = 2            # batch
C = 4            # image channels
IMG = 16         # image height/width
P = 8            # patch size
D = 32           # hidden size
HEADS = 4        # attention heads
DH = D // HEADS  # head dim
LAYERS = 2       # encoder layers
MLP = 64         # intermediate (MLP) size
NUM_CLASSES = 1  # regressor outputs
LN_EPS = 1e-12   # ViTConfig.layer_norm_eps
INV_SQRT2 = 1.0 / math.sqrt(2.0)


# ------------------------- fused kernel -------------------------
def _vit_fused_kernel(patches_ref, embbias_ref, wpatch_ref,
                      ln1g_ref, ln1b_ref, wqkv_ref, bqkv_ref, wo_ref, bo_ref,
                      ln2g_ref, ln2b_ref, w1_ref, b1_ref, w2_ref, b2_ref,
                      lnfg_ref, lnfb_ref, regw_ref, regb_ref,
                      o_ref):
    """One grid step == one batch element. Everything stays in VMEM/vregs."""
    f32 = jnp.float32

    def layer_norm(v, g, b):
        mean = jnp.mean(v, axis=-1, keepdims=True)
        var = jnp.mean((v - mean) ** 2, axis=-1, keepdims=True)
        return (v - mean) * jax.lax.rsqrt(var + LN_EPS) * g + b

    def erf(v):
        # Abramowitz & Stegun 7.1.26 polynomial (|err| < 1.5e-7): gives the
        # exact-GELU semantics of HF ViT using only exp/abs/where.
        a1, a2, a3, a4, a5 = (0.254829592, -0.284496736, 1.421413741,
                              -1.453152027, 1.061405429)
        pp = 0.3275911
        av = jnp.abs(v)
        t = 1.0 / (1.0 + pp * av)
        poly = ((((a5 * t + a4) * t + a3) * t + a2) * t + a1) * t
        r = 1.0 - poly * jnp.exp(-av * av)
        return jnp.where(v >= 0.0, r, -r)

    # --- patch embedding; CLS token + position embeddings + conv bias are all
    #     folded into `embbias` (row 0 of `patches` is zero). ---
    patches = patches_ref[0].astype(f32)                               # (S, CPP)
    x = jnp.dot(patches, wpatch_ref[...].astype(f32),
                preferred_element_type=f32) + embbias_ref[...].astype(f32)

    ln1g = ln1g_ref[...].astype(f32)
    ln1b = ln1b_ref[...].astype(f32)
    bqkv = bqkv_ref[...].astype(f32)
    bo = bo_ref[...].astype(f32)
    ln2g = ln2g_ref[...].astype(f32)
    ln2b = ln2b_ref[...].astype(f32)
    b1 = b1_ref[...].astype(f32)
    b2 = b2_ref[...].astype(f32)

    for l in range(wqkv_ref.shape[0]):           # static unroll over layers
        # ---- attention block (LN1 fused into the merged QKV matmul) ----
        xn = layer_norm(x, ln1g[l:l + 1, :], ln1b[l:l + 1, :])
        qkv = jnp.dot(xn, wqkv_ref[l].astype(f32),
                      preferred_element_type=f32) + bqkv[l:l + 1, :]   # (S, 3D)
        wo_l = wo_ref[l].astype(f32)                                   # (D, D)

        attn = None
        for h in range(HEADS):                   # static unroll over heads
            lo = h * DH
            qh = qkv[:, lo:lo + DH]              # 1/sqrt(dh) folded into Wq/bq
            kh = qkv[:, D + lo:D + lo + DH]
            vh = qkv[:, 2 * D + lo:2 * D + lo + DH]
            s = jnp.dot(qh, kh.T, preferred_element_type=f32)          # (S, S)
            m = jnp.max(s, axis=-1, keepdims=True)
            p = jnp.exp(s - m)
            p = p * pl.reciprocal(jnp.sum(p, axis=-1, keepdims=True),
                                  approx=True)
            ctx_h = jnp.dot(p, vh, preferred_element_type=f32)         # (S, DH)
            # head-merge + out-projection folded per head -> lane-dense D
            part = jnp.dot(ctx_h, wo_l[lo:lo + DH, :],
                           preferred_element_type=f32)                 # (S, D)
            attn = part if attn is None else attn + part
        x = x + attn + bo[l:l + 1, :]

        # ---- MLP block (LN2 fused into the up-projection matmul) ----
        xn2 = layer_norm(x, ln2g[l:l + 1, :], ln2b[l:l + 1, :])
        hmid = jnp.dot(xn2, w1_ref[l].astype(f32),
                       preferred_element_type=f32) + b1[l:l + 1, :]    # (S, MLP)
        hmid = 0.5 * hmid * (1.0 + erf(hmid * INV_SQRT2))              # exact GELU
        x = x + jnp.dot(hmid, w2_ref[l].astype(f32),
                        preferred_element_type=f32) + b2[l:l + 1, :]

    # ---- final LayerNorm -> CLS token -> regressor (fused) ----
    xf = layer_norm(x, lnfg_ref[...].astype(f32), lnfb_ref[...].astype(f32))
    cls_tok = xf[0:1, :]                                               # (1, D)
    out = jnp.dot(cls_tok, regw_ref[...].astype(f32),
                  preferred_element_type=f32) + regb_ref[...].astype(f32)
    o_ref[0] = out.astype(o_ref.dtype)


# ------------------------- parameters -------------------------
def init_params(key):
    keys = iter(jax.random.split(key, 128))

    def nrm(shape, scale=0.02):
        return scale * jax.random.normal(next(keys), shape, dtype=jnp.float32)

    params = {
        # Conv2d(C, D, kernel=P, stride=P) weight in torch layout (D, C, P, P)
        "patch_w": nrm((D, C, P, P)),
        "patch_b": nrm((D,)),
        "cls": nrm((1, 1, D)),
        "pos": nrm((1, (IMG // P) * (IMG // P) + 1, D)),
        "ln_f_g": jnp.ones((D,), jnp.float32),
        "ln_f_b": jnp.zeros((D,), jnp.float32),
        # regressor nn.Linear(D, NUM_CLASSES); stored as (in, out)
        "reg_w": nrm((D, NUM_CLASSES)),
        "reg_b": nrm((NUM_CLASSES,)),
        "layers": [],
    }
    for _ in range(LAYERS):
        params["layers"].append(dict(
            ln1_g=jnp.ones((D,), jnp.float32), ln1_b=jnp.zeros((D,), jnp.float32),
            wq=nrm((D, D)), bq=nrm((D,)),
            wk=nrm((D, D)), bk=nrm((D,)),
            wv=nrm((D, D)), bv=nrm((D,)),
            wo=nrm((D, D)), bo=nrm((D,)),
            ln2_g=jnp.ones((D,), jnp.float32), ln2_b=jnp.zeros((D,), jnp.float32),
            w1=nrm((D, MLP)), b1=nrm((MLP,)),
            w2=nrm((MLP, D)), b2=nrm((D,)),
        ))
    return params


# ------------------------- forward -------------------------
def vit_object_counter_forward(params, images):
    """images: (B, C, H, W) NCHW float32 -> count_pred: (B, NUM_CLASSES)."""
    Bsz, Cc, H, W = images.shape
    Hp, Wp = H // P, W // P
    Np = Hp * Wp
    seq = Np + 1
    cpp = Cc * P * P

    # --- trace-time layout glue (im2row + weight packing); no activation
    #     round-trips between kernels. ---
    patches = (images.reshape(Bsz, Cc, Hp, P, Wp, P)
                     .transpose(0, 2, 4, 1, 3, 5)
                     .reshape(Bsz, Np, cpp))
    # zero row at the CLS position so the patch matmul covers the whole seq
    patches = jnp.concatenate(
        [jnp.zeros((Bsz, 1, cpp), patches.dtype), patches], axis=1)    # (B,S,CPP)

    pos = params["pos"][0]                                             # (S, D)
    emb_bias = jnp.concatenate(
        [params["cls"][0] + pos[0:1, :],
         params["patch_b"][None, :] + pos[1:, :]], axis=0)             # (S, D)
    w_patch = params["patch_w"].reshape(D, cpp).T                      # (CPP, D)

    layers = params["layers"]
    scale = 1.0 / math.sqrt(DH)            # attention scale folded into Q proj
    wqkv = jnp.stack([jnp.concatenate([l["wq"] * scale, l["wk"], l["wv"]],
                                      axis=1) for l in layers])        # (L,D,3D)
    bqkv = jnp.stack([jnp.concatenate([l["bq"] * scale, l["bk"], l["bv"]],
                                      axis=0) for l in layers])        # (L,3D)
    ln1_g = jnp.stack([l["ln1_g"] for l in layers])
    ln1_b = jnp.stack([l["ln1_b"] for l in layers])
    wo = jnp.stack([l["wo"] for l in layers])
    bo = jnp.stack([l["bo"] for l in layers])
    ln2_g = jnp.stack([l["ln2_g"] for l in layers])
    ln2_b = jnp.stack([l["ln2_b"] for l in layers])
    w1 = jnp.stack([l["w1"] for l in layers])
    b1 = jnp.stack([l["b1"] for l in layers])
    w2 = jnp.stack([l["w2"] for l in layers])
    b2 = jnp.stack([l["b2"] for l in layers])

    lnf_g = params["ln_f_g"].reshape(1, D)
    lnf_b = params["ln_f_b"].reshape(1, D)
    reg_w = params["reg_w"]                                            # (D, NC)
    reg_b = params["reg_b"].reshape(1, NUM_CLASSES)

    operands = (patches, emb_bias, w_patch,
                ln1_g, ln1_b, wqkv, bqkv, wo, bo,
                ln2_g, ln2_b, w1, b1, w2, b2,
                lnf_g, lnf_b, reg_w, reg_b)

    def full(arr):
        nd = arr.ndim
        return pl.BlockSpec(arr.shape, lambda b, _nd=nd: (0,) * _nd)

    in_specs = [pl.BlockSpec((1, seq, cpp), lambda b: (b, 0, 0))]
    in_specs += [full(a) for a in operands[1:]]

    out = pl.pallas_call(
        _vit_fused_kernel,
        out_shape=jax.ShapeDtypeStruct((Bsz, 1, NUM_CLASSES), jnp.float32),
        grid=(Bsz,),
        in_specs=in_specs,
        out_specs=pl.BlockSpec((1, 1, NUM_CLASSES), lambda b: (b, 0, 0)),
        compiler_params=pltpu.CompilerParams(
            dimension_semantics=("parallel",)),
    )(*operands)
    return out.reshape(Bsz, NUM_CLASSES)


# ------------------------- main -------------------------
if __name__ == "__main__":
    key = jax.random.PRNGKey(0)
    k_params, k_img = jax.random.split(key)
    params = init_params(k_params)
    images = jax.random.normal(k_img, (B, C, IMG, IMG), dtype=jnp.float32)

    fwd = jax.jit(vit_object_counter_forward)
    out = fwd(params, images)
    out = jax.block_until_ready(out)

    assert out.shape == (B, NUM_CLASSES), out.shape
    assert out.dtype == jnp.float32
    print("KERNEL_OK")
</pallas_src>

<mosaic_0001>
module attributes {stable_mosaic.version = 11 : i64} {
  func.func @_vit_fused_kernel(%arg0: i32, %arg1: memref<1x5x256xf32, #tpu.memory_space<vmem>>, %arg2: memref<5x32xf32, #tpu.memory_space<vmem>>, %arg3: memref<256x32xf32, #tpu.memory_space<vmem>>, %arg4: memref<2x32xf32, #tpu.memory_space<vmem>>, %arg5: memref<2x32xf32, #tpu.memory_space<vmem>>, %arg6: memref<2x32x96xf32, #tpu.memory_space<vmem>>, %arg7: memref<2x96xf32, #tpu.memory_space<vmem>>, %arg8: memref<2x32x32xf32, #tpu.memory_space<vmem>>, %arg9: memref<2x32xf32, #tpu.memory_space<vmem>>, %arg10: memref<2x32xf32, #tpu.memory_space<vmem>>, %arg11: memref<2x32xf32, #tpu.memory_space<vmem>>, %arg12: memref<2x32x64xf32, #tpu.memory_space<vmem>>, %arg13: memref<2x64xf32, #tpu.memory_space<vmem>>, %arg14: memref<2x64x32xf32, #tpu.memory_space<vmem>>, %arg15: memref<2x32xf32, #tpu.memory_space<vmem>>, %arg16: memref<1x32xf32, #tpu.memory_space<vmem>>, %arg17: memref<1x32xf32, #tpu.memory_space<vmem>>, %arg18: memref<32x1xf32, #tpu.memory_space<vmem>>, %arg19: memref<1x1xf32, #tpu.memory_space<vmem>>, %arg20: memref<1x1x1xf32, #tpu.memory_space<vmem>>) attributes {dimension_semantics = [#tpu.dimension_semantics<parallel>], iteration_bounds = array<i64: 2>, scalar_prefetch = 0 : i64, scratch_operands = 0 : i64, tpu.core_type = #tpu.core_type<tc>, window_params = [{transform_indices = @transform_0, window_bounds = array<i64: 1, 5, 256>}, {pipeline_mode = #tpu.pipeline_mode<synchronous>, transform_indices = @transform_1, window_bounds = array<i64: 5, 32>}, {pipeline_mode = #tpu.pipeline_mode<synchronous>, transform_indices = @transform_2, window_bounds = array<i64: 256, 32>}, {pipeline_mode = #tpu.pipeline_mode<synchronous>, transform_indices = @transform_3, window_bounds = array<i64: 2, 32>}, {pipeline_mode = #tpu.pipeline_mode<synchronous>, transform_indices = @transform_4, window_bounds = array<i64: 2, 32>}, {pipeline_mode = #tpu.pipeline_mode<synchronous>, transform_indices = @transform_5, window_bounds = array<i64: 2, 32, 96>}, {pipeline_mode = #tpu.pipeline_mode<synchronous>, transform_indices = @transform_6, window_bounds = array<i64: 2, 96>}, {pipeline_mode = #tpu.pipeline_mode<synchronous>, transform_indices = @transform_7, window_bounds = array<i64: 2, 32, 32>}, {pipeline_mode = #tpu.pipeline_mode<synchronous>, transform_indices = @transform_8, window_bounds = array<i64: 2, 32>}, {pipeline_mode = #tpu.pipeline_mode<synchronous>, transform_indices = @transform_9, window_bounds = array<i64: 2, 32>}, {pipeline_mode = #tpu.pipeline_mode<synchronous>, transform_indices = @transform_10, window_bounds = array<i64: 2, 32>}, {pipeline_mode = #tpu.pipeline_mode<synchronous>, transform_indices = @transform_11, window_bounds = array<i64: 2, 32, 64>}, {pipeline_mode = #tpu.pipeline_mode<synchronous>, transform_indices = @transform_12, window_bounds = array<i64: 2, 64>}, {pipeline_mode = #tpu.pipeline_mode<synchronous>, transform_indices = @transform_13, window_bounds = array<i64: 2, 64, 32>}, {pipeline_mode = #tpu.pipeline_mode<synchronous>, transform_indices = @transform_14, window_bounds = array<i64: 2, 32>}, {pipeline_mode = #tpu.pipeline_mode<synchronous>, transform_indices = @transform_15, window_bounds = array<i64: 1, 32>}, {pipeline_mode = #tpu.pipeline_mode<synchronous>, transform_indices = @transform_16, window_bounds = array<i64: 1, 32>}, {pipeline_mode = #tpu.pipeline_mode<synchronous>, transform_indices = @transform_17, window_bounds = array<i64: 32, 1>}, {pipeline_mode = #tpu.pipeline_mode<synchronous>, transform_indices = @transform_18, window_bounds = array<i64: 1, 1>}, {transform_indices = @transform_19, window_bounds = array<i64: 1, 1, 1>}]} {
    %c0 = arith.constant 0 : index
    %c0_0 = arith.constant 0 : index
    %c0_1 = arith.constant 0 : index
    %0 = vector.load %arg1[%c0, %c0_0, %c0_1] : memref<1x5x256xf32, #tpu.memory_space<vmem>>, vector<1x5x256xf32>
    %1 = vector.shape_cast %0 : vector<1x5x256xf32> to vector<5x256xf32>
    %c0_2 = arith.constant 0 : index
    %c0_3 = arith.constant 0 : index
    %2 = vector.load %arg3[%c0_2, %c0_3] : memref<256x32xf32, #tpu.memory_space<vmem>>, vector<256x32xf32>
    %cst = arith.constant dense<0.000000e+00> : vector<5x32xf32>
    %3 = tpu.matmul %1, %2, %cst {dimension_numbers = #tpu.dot_dimension_numbers<[1], [0], [0], [1], [0, 0, 1, 1], [], []>} : vector<5x256xf32>, vector<256x32xf32>, vector<5x32xf32> -> vector<5x32xf32>
    %c0_4 = arith.constant 0 : index
    %c0_5 = arith.constant 0 : index
    %4 = vector.load %arg2[%c0_4, %c0_5] : memref<5x32xf32, #tpu.memory_space<vmem>>, vector<5x32xf32>
    %5 = arith.addf %3, %4 : vector<5x32xf32>
    %c0_6 = arith.constant 0 : index
    %c0_7 = arith.constant 0 : index
    %6 = vector.load %arg4[%c0_6, %c0_7] : memref<2x32xf32, #tpu.memory_space<vmem>>, vector<2x32xf32>
    %c0_8 = arith.constant 0 : index
    %c0_9 = arith.constant 0 : index
    %7 = vector.load %arg5[%c0_8, %c0_9] : memref<2x32xf32, #tpu.memory_space<vmem>>, vector<2x32xf32>
    %c0_10 = arith.constant 0 : index
    %c0_11 = arith.constant 0 : index
    %8 = vector.load %arg7[%c0_10, %c0_11] : memref<2x96xf32, #tpu.memory_space<vmem>>, vector<2x96xf32>
    %c0_12 = arith.constant 0 : index
    %c0_13 = arith.constant 0 : index
    %9 = vector.load %arg9[%c0_12, %c0_13] : memref<2x32xf32, #tpu.memory_space<vmem>>, vector<2x32xf32>
    %c0_14 = arith.constant 0 : index
    %c0_15 = arith.constant 0 : index
    %10 = vector.load %arg10[%c0_14, %c0_15] : memref<2x32xf32, #tpu.memory_space<vmem>>, vector<2x32xf32>
    %c0_16 = arith.constant 0 : index
    %c0_17 = arith.constant 0 : index
    %11 = vector.load %arg11[%c0_16, %c0_17] : memref<2x32xf32, #tpu.memory_space<vmem>>, vector<2x32xf32>
    %c0_18 = arith.constant 0 : index
    %c0_19 = arith.constant 0 : index
    %12 = vector.load %arg13[%c0_18, %c0_19] : memref<2x64xf32, #tpu.memory_space<vmem>>, vector<2x64xf32>
    %c0_20 = arith.constant 0 : index
    %c0_21 = arith.constant 0 : index
    %13 = vector.load %arg15[%c0_20, %c0_21] : memref<2x32xf32, #tpu.memory_space<vmem>>, vector<2x32xf32>
    %14 = vector.extract_strided_slice %6 {offsets = [0, 0], sizes = [1, 32], strides = [1, 1]} : vector<2x32xf32> to vector<1x32xf32>
    %15 = vector.extract_strided_slice %7 {offsets = [0, 0], sizes = [1, 32], strides = [1, 1]} : vector<2x32xf32> to vector<1x32xf32>
    %cst_22 = arith.constant dense<0.000000e+00> : vector<5xf32>
    %16 = vector.multi_reduction <add>, %5, %cst_22 [1] : vector<5x32xf32> to vector<5xf32>
    %17 = vector.shape_cast %16 : vector<5xf32> to vector<5x1xf32>
    %cst_23 = arith.constant 3.200000e+01 : f32
    %18 = vector.broadcast %cst_23 : f32 to vector<5x1xf32>
    %19 = arith.divf %17, %18 : vector<5x1xf32>
    %20 = vector.broadcast %19 : vector<5x1xf32> to vector<5x32xf32>
    %21 = arith.subf %5, %20 : vector<5x32xf32>
    %22 = arith.mulf %21, %21 : vector<5x32xf32>
    %cst_24 = arith.constant dense<0.000000e+00> : vector<5xf32>
    %23 = vector.multi_reduction <add>, %22, %cst_24 [1] : vector<5x32xf32> to vector<5xf32>
    %24 = vector.shape_cast %23 : vector<5xf32> to vector<5x1xf32>
    %cst_25 = arith.constant 3.200000e+01 : f32
    %25 = vector.broadcast %cst_25 : f32 to vector<5x1xf32>
    %26 = arith.divf %24, %25 : vector<5x1xf32>
    %27 = vector.broadcast %19 : vector<5x1xf32> to vector<5x32xf32>
    %28 = arith.subf %5, %27 : vector<5x32xf32>
    %cst_26 = arith.constant 9.99999996E-13 : f32
    %29 = vector.broadcast %cst_26 : f32 to vector<5x1xf32>
    %30 = arith.addf %26, %29 : vector<5x1xf32>
    %31 = math.rsqrt %30 : vector<5x1xf32>
    %32 = vector.broadcast %31 : vector<5x1xf32> to vector<5x32xf32>
    %33 = arith.mulf %28, %32 : vector<5x32xf32>
    %34 = vector.broadcast %14 : vector<1x32xf32> to vector<5x32xf32>
    %35 = arith.mulf %33, %34 : vector<5x32xf32>
    %36 = vector.broadcast %15 : vector<1x32xf32> to vector<5x32xf32>
    %37 = arith.addf %35, %36 : vector<5x32xf32>
    %c0_27 = arith.constant 0 : index
    %c0_28 = arith.constant 0 : index
    %c0_29 = arith.constant 0 : index
    %38 = vector.load %arg6[%c0_27, %c0_28, %c0_29] : memref<2x32x96xf32, #tpu.memory_space<vmem>>, vector<1x32x96xf32>
    %39 = vector.shape_cast %38 : vector<1x32x96xf32> to vector<32x96xf32>
    %cst_30 = arith.constant dense<0.000000e+00> : vector<5x96xf32>
    %40 = tpu.matmul %37, %39, %cst_30 {dimension_numbers = #tpu.dot_dimension_numbers<[1], [0], [0], [1], [0, 0, 1, 1], [], []>} : vector<5x32xf32>, vector<32x96xf32>, vector<5x96xf32> -> vector<5x96xf32>
    %41 = vector.extract_strided_slice %8 {offsets = [0, 0], sizes = [1, 96], strides = [1, 1]} : vector<2x96xf32> to vector<1x96xf32>
    %42 = vector.broadcast %41 : vector<1x96xf32> to vector<5x96xf32>
    %43 = arith.addf %40, %42 : vector<5x96xf32>
    %c0_31 = arith.constant 0 : index
    %c0_32 = arith.constant 0 : index
    %c0_33 = arith.constant 0 : index
    %44 = vector.load %arg8[%c0_31, %c0_32, %c0_33] : memref<2x32x32xf32, #tpu.memory_space<vmem>>, vector<1x32x32xf32>
    %45 = vector.shape_cast %44 : vector<1x32x32xf32> to vector<32x32xf32>
    %46 = vector.extract_strided_slice %43 {offsets = [0, 0], sizes = [5, 8], strides = [1, 1]} : vector<5x96xf32> to vector<5x8xf32>
    %47 = vector.extract_strided_slice %43 {offsets = [0, 32], sizes = [5, 8], strides = [1, 1]} : vector<5x96xf32> to vector<5x8xf32>
    %48 = vector.extract_strided_slice %43 {offsets = [0, 64], sizes = [5, 8], strides = [1, 1]} : vector<5x96xf32> to vector<5x8xf32>
    %49 = tpu.transpose %47, [1, 0] : vector<5x8xf32> -> vector<8x5xf32>
    %cst_34 = arith.constant dense<0.000000e+00> : vector<5x5xf32>
    %50 = tpu.matmul %46, %49, %cst_34 {dimension_numbers = #tpu.dot_dimension_numbers<[1], [0], [0], [1], [0, 0, 1, 1], [], []>} : vector<5x8xf32>, vector<8x5xf32>, vector<5x5xf32> -> vector<5x5xf32>
    %cst_35 = arith.constant dense<0xFF800000> : vector<5xf32>
    %51 = vector.multi_reduction <maximumf>, %50, %cst_35 [1] : vector<5x5xf32> to vector<5xf32>
    %52 = vector.shape_cast %51 : vector<5xf32> to vector<5x1xf32>
    %53 = vector.broadcast %52 : vector<5x1xf32> to vector<5x5xf32>
    %54 = arith.subf %50, %53 : vector<5x5xf32>
    %55 = math.exp %54 : vector<5x5xf32>
    %cst_36 = arith.constant dense<0.000000e+00> : vector<5xf32>
    %56 = vector.multi_reduction <add>, %55, %cst_36 [1] : vector<5x5xf32> to vector<5xf32>
    %57 = vector.shape_cast %56 : vector<5xf32> to vector<5x1xf32>
    %58 = tpu.reciprocal %57 {approx = true} : vector<5x1xf32> -> vector<5x1xf32>
    %59 = vector.broadcast %58 : vector<5x1xf32> to vector<5x5xf32>
    %60 = arith.mulf %55, %59 : vector<5x5xf32>
    %cst_37 = arith.constant dense<0.000000e+00> : vector<5x8xf32>
    %61 = tpu.matmul %60, %48, %cst_37 {dimension_numbers = #tpu.dot_dimension_numbers<[1], [0], [0], [1], [0, 0, 1, 1], [], []>} : vector<5x5xf32>, vector<5x8xf32>, vector<5x8xf32> -> vector<5x8xf32>
    %62 = vector.extract_strided_slice %45 {offsets = [0, 0], sizes = [8, 32], strides = [1, 1]} : vector<32x32xf32> to vector<8x32xf32>
    %cst_38 = arith.constant dense<0.000000e+00> : vector<5x32xf32>
    %63 = tpu.matmul %61, %62, %cst_38 {dimension_numbers = #tpu.dot_dimension_numbers<[1], [0], [0], [1], [0, 0, 1, 1], [], []>} : vector<5x8xf32>, vector<8x32xf32>, vector<5x32xf32> -> vector<5x32xf32>
    %64 = vector.extract_strided_slice %43 {offsets = [0, 8], sizes = [5, 8], strides = [1, 1]} : vector<5x96xf32> to vector<5x8xf32>
    %65 = vector.extract_strided_slice %43 {offsets = [0, 40], sizes = [5, 8], strides = [1, 1]} : vector<5x96xf32> to vector<5x8xf32>
    %66 = vector.extract_strided_slice %43 {offsets = [0, 72], sizes = [5, 8], strides = [1, 1]} : vector<5x96xf32> to vector<5x8xf32>
    %67 = tpu.transpose %65, [1, 0] : vector<5x8xf32> -> vector<8x5xf32>
    %cst_39 = arith.constant dense<0.000000e+00> : vector<5x5xf32>
    %68 = tpu.matmul %64, %67, %cst_39 {dimension_numbers = #tpu.dot_dimension_numbers<[1], [0], [0], [1], [0, 0, 1, 1], [], []>} : vector<5x8xf32>, vector<8x5xf32>, vector<5x5xf32> -> vector<5x5xf32>
    %cst_40 = arith.constant dense<0xFF800000> : vector<5xf32>
    %69 = vector.multi_reduction <maximumf>, %68, %cst_40 [1] : vector<5x5xf32> to vector<5xf32>
    %70 = vector.shape_cast %69 : vector<5xf32> to vector<5x1xf32>
    %71 = vector.broadcast %70 : vector<5x1xf32> to vector<5x5xf32>
    %72 = arith.subf %68, %71 : vector<5x5xf32>
    %73 = math.exp %72 : vector<5x5xf32>
    %cst_41 = arith.constant dense<0.000000e+00> : vector<5xf32>
    %74 = vector.multi_reduction <add>, %73, %cst_41 [1] : vector<5x5xf32> to vector<5xf32>
    %75 = vector.shape_cast %74 : vector<5xf32> to vector<5x1xf32>
    %76 = tpu.reciprocal %75 {approx = true} : vector<5x1xf32> -> vector<5x1xf32>
    %77 = vector.broadcast %76 : vector<5x1xf32> to vector<5x5xf32>
    %78 = arith.mulf %73, %77 : vector<5x5xf32>
    %cst_42 = arith.constant dense<0.000000e+00> : vector<5x8xf32>
    %79 = tpu.matmul %78, %66, %cst_42 {dimension_numbers = #tpu.dot_dimension_numbers<[1], [0], [0], [1], [0, 0, 1, 1], [], []>} : vector<5x5xf32>, vector<5x8xf32>, vector<5x8xf32> -> vector<5x8xf32>
    %80 = vector.extract_strided_slice %45 {offsets = [8, 0], sizes = [8, 32], strides = [1, 1]} : vector<32x32xf32> to vector<8x32xf32>
    %cst_43 = arith.constant dense<0.000000e+00> : vector<5x32xf32>
    %81 = tpu.matmul %79, %80, %cst_43 {dimension_numbers = #tpu.dot_dimension_numbers<[1], [0], [0], [1], [0, 0, 1, 1], [], []>} : vector<5x8xf32>, vector<8x32xf32>, vector<5x32xf32> -> vector<5x32xf32>
    %82 = arith.addf %63, %81 : vector<5x32xf32>
    %83 = vector.extract_strided_slice %43 {offsets = [0, 16], sizes = [5, 8], strides = [1, 1]} : vector<5x96xf32> to vector<5x8xf32>
    %84 = vector.extract_strided_slice %43 {offsets = [0, 48], sizes = [5, 8], strides = [1, 1]} : vector<5x96xf32> to vector<5x8xf32>
    %85 = vector.extract_strided_slice %43 {offsets = [0, 80], sizes = [5, 8], strides = [1, 1]} : vector<5x96xf32> to vector<5x8xf32>
    %86 = tpu.transpose %84, [1, 0] : vector<5x8xf32> -> vector<8x5xf32>
    %cst_44 = arith.constant dense<0.000000e+00> : vector<5x5xf32>
    %87 = tpu.matmul %83, %86, %cst_44 {dimension_numbers = #tpu.dot_dimension_numbers<[1], [0], [0], [1], [0, 0, 1, 1], [], []>} : vector<5x8xf32>, vector<8x5xf32>, vector<5x5xf32> -> vector<5x5xf32>
    %cst_45 = arith.constant dense<0xFF800000> : vector<5xf32>
    %88 = vector.multi_reduction <maximumf>, %87, %cst_45 [1] : vector<5x5xf32> to vector<5xf32>
    %89 = vector.shape_cast %88 : vector<5xf32> to vector<5x1xf32>
    %90 = vector.broadcast %89 : vector<5x1xf32> to vector<5x5xf32>
    %91 = arith.subf %87, %90 : vector<5x5xf32>
    %92 = math.exp %91 : vector<5x5xf32>
    %cst_46 = arith.constant dense<0.000000e+00> : vector<5xf32>
    %93 = vector.multi_reduction <add>, %92, %cst_46 [1] : vector<5x5xf32> to vector<5xf32>
    %94 = vector.shape_cast %93 : vector<5xf32> to vector<5x1xf32>
    %95 = tpu.reciprocal %94 {approx = true} : vector<5x1xf32> -> vector<5x1xf32>
    %96 = vector.broadcast %95 : vector<5x1xf32> to vector<5x5xf32>
    %97 = arith.mulf %92, %96 : vector<5x5xf32>
    %cst_47 = arith.constant dense<0.000000e+00> : vector<5x8xf32>
    %98 = tpu.matmul %97, %85, %cst_47 {dimension_numbers = #tpu.dot_dimension_numbers<[1], [0], [0], [1], [0, 0, 1, 1], [], []>} : vector<5x5xf32>, vector<5x8xf32>, vector<5x8xf32> -> vector<5x8xf32>
    %99 = vector.extract_strided_slice %45 {offsets = [16, 0], sizes = [8, 32], strides = [1, 1]} : vector<32x32xf32> to vector<8x32xf32>
    %cst_48 = arith.constant dense<0.000000e+00> : vector<5x32xf32>
    %100 = tpu.matmul %98, %99, %cst_48 {dimension_numbers = #tpu.dot_dimension_numbers<[1], [0], [0], [1], [0, 0, 1, 1], [], []>} : vector<5x8xf32>, vector<8x32xf32>, vector<5x32xf32> -> vector<5x32xf32>
    %101 = arith.addf %82, %100 : vector<5x32xf32>
    %102 = vector.extract_strided_slice %43 {offsets = [0, 24], sizes = [5, 8], strides = [1, 1]} : vector<5x96xf32> to vector<5x8xf32>
    %103 = vector.extract_strided_slice %43 {offsets = [0, 56], sizes = [5, 8], strides = [1, 1]} : vector<5x96xf32> to vector<5x8xf32>
    %104 = vector.extract_strided_slice %43 {offsets = [0, 88], sizes = [5, 8], strides = [1, 1]} : vector<5x96xf32> to vector<5x8xf32>
    %105 = tpu.transpose %103, [1, 0] : vector<5x8xf32> -> vector<8x5xf32>
    %cst_49 = arith.constant dense<0.000000e+00> : vector<5x5xf32>
    %106 = tpu.matmul %102, %105, %cst_49 {dimension_numbers = #tpu.dot_dimension_numbers<[1], [0], [0], [1], [0, 0, 1, 1], [], []>} : vector<5x8xf32>, vector<8x5xf32>, vector<5x5xf32> -> vector<5x5xf32>
    %cst_50 = arith.constant dense<0xFF800000> : vector<5xf32>
    %107 = vector.multi_reduction <maximumf>, %106, %cst_50 [1] : vector<5x5xf32> to vector<5xf32>
    %108 = vector.shape_cast %107 : vector<5xf32> to vector<5x1xf32>
    %109 = vector.broadcast %108 : vector<5x1xf32> to vector<5x5xf32>
    %110 = arith.subf %106, %109 : vector<5x5xf32>
    %111 = math.exp %110 : vector<5x5xf32>
    %cst_51 = arith.constant dense<0.000000e+00> : vector<5xf32>
    %112 = vector.multi_reduction <add>, %111, %cst_51 [1] : vector<5x5xf32> to vector<5xf32>
    %113 = vector.shape_cast %112 : vector<5xf32> to vector<5x1xf32>
    %114 = tpu.reciprocal %113 {approx = true} : vector<5x1xf32> -> vector<5x1xf32>
    %115 = vector.broadcast %114 : vector<5x1xf32> to vector<5x5xf32>
    %116 = arith.mulf %111, %115 : vector<5x5xf32>
    %cst_52 = arith.constant dense<0.000000e+00> : vector<5x8xf32>
    %117 = tpu.matmul %116, %104, %cst_52 {dimension_numbers = #tpu.dot_dimension_numbers<[1], [0], [0], [1], [0, 0, 1, 1], [], []>} : vector<5x5xf32>, vector<5x8xf32>, vector<5x8xf32> -> vector<5x8xf32>
    %118 = vector.extract_strided_slice %45 {offsets = [24, 0], sizes = [8, 32], strides = [1, 1]} : vector<32x32xf32> to vector<8x32xf32>
    %cst_53 = arith.constant dense<0.000000e+00> : vector<5x32xf32>
    %119 = tpu.matmul %117, %118, %cst_53 {dimension_numbers = #tpu.dot_dimension_numbers<[1], [0], [0], [1], [0, 0, 1, 1], [], []>} : vector<5x8xf32>, vector<8x32xf32>, vector<5x32xf32> -> vector<5x32xf32>
    %120 = arith.addf %101, %119 : vector<5x32xf32>
    %121 = arith.addf %5, %120 : vector<5x32xf32>
    %122 = vector.extract_strided_slice %9 {offsets = [0, 0], sizes = [1, 32], strides = [1, 1]} : vector<2x32xf32> to vector<1x32xf32>
    %123 = vector.broadcast %122 : vector<1x32xf32> to vector<5x32xf32>
    %124 = arith.addf %121, %123 : vector<5x32xf32>
    %125 = vector.extract_strided_slice %10 {offsets = [0, 0], sizes = [1, 32], strides = [1, 1]} : vector<2x32xf32> to vector<1x32xf32>
    %126 = vector.extract_strided_slice %11 {offsets = [0, 0], sizes = [1, 32], strides = [1, 1]} : vector<2x32xf32> to vector<1x32xf32>
    %cst_54 = arith.constant dense<0.000000e+00> : vector<5xf32>
    %127 = vector.multi_reduction <add>, %124, %cst_54 [1] : vector<5x32xf32> to vector<5xf32>
    %128 = vector.shape_cast %127 : vector<5xf32> to vector<5x1xf32>
    %cst_55 = arith.constant 3.200000e+01 : f32
    %129 = vector.broadcast %cst_55 : f32 to vector<5x1xf32>
    %130 = arith.divf %128, %129 : vector<5x1xf32>
    %131 = vector.broadcast %130 : vector<5x1xf32> to vector<5x32xf32>
    %132 = arith.subf %124, %131 : vector<5x32xf32>
    %133 = arith.mulf %132, %132 : vector<5x32xf32>
    %cst_56 = arith.constant dense<0.000000e+00> : vector<5xf32>
    %134 = vector.multi_reduction <add>, %133, %cst_56 [1] : vector<5x32xf32> to vector<5xf32>
    %135 = vector.shape_cast %134 : vector<5xf32> to vector<5x1xf32>
    %cst_57 = arith.constant 3.200000e+01 : f32
    %136 = vector.broadcast %cst_57 : f32 to vector<5x1xf32>
    %137 = arith.divf %135, %136 : vector<5x1xf32>
    %138 = vector.broadcast %130 : vector<5x1xf32> to vector<5x32xf32>
    %139 = arith.subf %124, %138 : vector<5x32xf32>
    %cst_58 = arith.constant 9.99999996E-13 : f32
    %140 = vector.broadcast %cst_58 : f32 to vector<5x1xf32>
    %141 = arith.addf %137, %140 : vector<5x1xf32>
    %142 = math.rsqrt %141 : vector<5x1xf32>
    %143 = vector.broadcast %142 : vector<5x1xf32> to vector<5x32xf32>
    %144 = arith.mulf %139, %143 : vector<5x32xf32>
    %145 = vector.broadcast %125 : vector<1x32xf32> to vector<5x32xf32>
    %146 = arith.mulf %144, %145 : vector<5x32xf32>
    %147 = vector.broadcast %126 : vector<1x32xf32> to vector<5x32xf32>
    %148 = arith.addf %146, %147 : vector<5x32xf32>
    %c0_59 = arith.constant 0 : index
    %c0_60 = arith.constant 0 : index
    %c0_61 = arith.constant 0 : index
    %149 = vector.load %arg12[%c0_59, %c0_60, %c0_61] : memref<2x32x64xf32, #tpu.memory_space<vmem>>, vector<1x32x64xf32>
    %150 = vector.shape_cast %149 : vector<1x32x64xf32> to vector<32x64xf32>
    %cst_62 = arith.constant dense<0.000000e+00> : vector<5x64xf32>
    %151 = tpu.matmul %148, %150, %cst_62 {dimension_numbers = #tpu.dot_dimension_numbers<[1], [0], [0], [1], [0, 0, 1, 1], [], []>} : vector<5x32xf32>, vector<32x64xf32>, vector<5x64xf32> -> vector<5x64xf32>
    %152 = vector.extract_strided_slice %12 {offsets = [0, 0], sizes = [1, 64], strides = [1, 1]} : vector<2x64xf32> to vector<1x64xf32>
    %153 = vector.broadcast %152 : vector<1x64xf32> to vector<5x64xf32>
    %154 = arith.addf %151, %153 : vector<5x64xf32>
    %cst_63 = arith.constant 5.000000e-01 : f32
    %155 = vector.broadcast %cst_63 : f32 to vector<5x64xf32>
    %156 = arith.mulf %155, %154 : vector<5x64xf32>
    %cst_64 = arith.constant 0.707106769 : f32
    %157 = vector.broadcast %cst_64 : f32 to vector<5x64xf32>
    %158 = arith.mulf %154, %157 : vector<5x64xf32>
    %159 = math.absf %158 : vector<5x64xf32>
    %cst_65 = arith.constant 0.327591091 : f32
    %160 = vector.broadcast %cst_65 : f32 to vector<5x64xf32>
    %161 = arith.mulf %160, %159 : vector<5x64xf32>
    %cst_66 = arith.constant 1.000000e+00 : f32
    %162 = vector.broadcast %cst_66 : f32 to vector<5x64xf32>
    %163 = arith.addf %162, %161 : vector<5x64xf32>
    %cst_67 = arith.constant 1.000000e+00 : f32
    %164 = vector.broadcast %cst_67 : f32 to vector<5x64xf32>
    %165 = arith.divf %164, %163 : vector<5x64xf32>
    %cst_68 = arith.constant 1.06140542 : f32
    %166 = vector.broadcast %cst_68 : f32 to vector<5x64xf32>
    %167 = arith.mulf %166, %165 : vector<5x64xf32>
    %cst_69 = arith.constant -1.45315206 : f32
    %168 = vector.broadcast %cst_69 : f32 to vector<5x64xf32>
    %169 = arith.addf %167, %168 : vector<5x64xf32>
    %170 = arith.mulf %169, %165 : vector<5x64xf32>
    %cst_70 = arith.constant 1.42141378 : f32
    %171 = vector.broadcast %cst_70 : f32 to vector<5x64xf32>
    %172 = arith.addf %170, %171 : vector<5x64xf32>
    %173 = arith.mulf %172, %165 : vector<5x64xf32>
    %cst_71 = arith.constant -0.284496725 : f32
    %174 = vector.broadcast %cst_71 : f32 to vector<5x64xf32>
    %175 = arith.addf %173, %174 : vector<5x64xf32>
    %176 = arith.mulf %175, %165 : vector<5x64xf32>
    %cst_72 = arith.constant 0.254829586 : f32
    %177 = vector.broadcast %cst_72 : f32 to vector<5x64xf32>
    %178 = arith.addf %176, %177 : vector<5x64xf32>
    %179 = arith.mulf %178, %165 : vector<5x64xf32>
    %cst_73 = arith.constant 0.000000e+00 : f32
    %180 = vector.broadcast %cst_73 : f32 to vector<5x64xf32>
    %181 = arith.subf %180, %159 : vector<5x64xf32>
    %182 = arith.mulf %181, %159 : vector<5x64xf32>
    %183 = math.exp %182 : vector<5x64xf32>
    %184 = arith.mulf %179, %183 : vector<5x64xf32>
    %cst_74 = arith.constant 1.000000e+00 : f32
    %185 = vector.broadcast %cst_74 : f32 to vector<5x64xf32>
    %186 = arith.subf %185, %184 : vector<5x64xf32>
    %cst_75 = arith.constant 0.000000e+00 : f32
    %187 = vector.broadcast %cst_75 : f32 to vector<5x64xf32>
    %188 = arith.cmpf oge, %158, %187 : vector<5x64xf32>
    %cst_76 = arith.constant 0.000000e+00 : f32
    %189 = vector.broadcast %cst_76 : f32 to vector<5x64xf32>
    %190 = arith.subf %189, %186 : vector<5x64xf32>
    %191 = arith.select %188, %186, %190 : vector<5x64xi1>, vector<5x64xf32>
    %cst_77 = arith.constant 1.000000e+00 : f32
    %192 = vector.broadcast %cst_77 : f32 to vector<5x64xf32>
    %193 = arith.addf %192, %191 : vector<5x64xf32>
    %194 = arith.mulf %156, %193 : vector<5x64xf32>
    %c0_78 = arith.constant 0 : index
    %c0_79 = arith.constant 0 : index
    %c0_80 = arith.constant 0 : index
    %195 = vector.load %arg14[%c0_78, %c0_79, %c0_80] : memref<2x64x32xf32, #tpu.memory_space<vmem>>, vector<1x64x32xf32>
    %196 = vector.shape_cast %195 : vector<1x64x32xf32> to vector<64x32xf32>
    %cst_81 = arith.constant dense<0.000000e+00> : vector<5x32xf32>
    %197 = tpu.matmul %194, %196, %cst_81 {dimension_numbers = #tpu.dot_dimension_numbers<[1], [0], [0], [1], [0, 0, 1, 1], [], []>} : vector<5x64xf32>, vector<64x32xf32>, vector<5x32xf32> -> vector<5x32xf32>
    %198 = arith.addf %124, %197 : vector<5x32xf32>
    %199 = vector.extract_strided_slice %13 {offsets = [0, 0], sizes = [1, 32], strides = [1, 1]} : vector<2x32xf32> to vector<1x32xf32>
    %200 = vector.broadcast %199 : vector<1x32xf32> to vector<5x32xf32>
    %201 = arith.addf %198, %200 : vector<5x32xf32>
    %202 = vector.extract_strided_slice %6 {offsets = [1, 0], sizes = [1, 32], strides = [1, 1]} : vector<2x32xf32> to vector<1x32xf32>
    %203 = vector.extract_strided_slice %7 {offsets = [1, 0], sizes = [1, 32], strides = [1, 1]} : vector<2x32xf32> to vector<1x32xf32>
    %cst_82 = arith.constant dense<0.000000e+00> : vector<5xf32>
    %204 = vector.multi_reduction <add>, %201, %cst_82 [1] : vector<5x32xf32> to vector<5xf32>
    %205 = vector.shape_cast %204 : vector<5xf32> to vector<5x1xf32>
    %cst_83 = arith.constant 3.200000e+01 : f32
    %206 = vector.broadcast %cst_83 : f32 to vector<5x1xf32>
    %207 = arith.divf %205, %206 : vector<5x1xf32>
    %208 = vector.broadcast %207 : vector<5x1xf32> to vector<5x32xf32>
    %209 = arith.subf %201, %208 : vector<5x32xf32>
    %210 = arith.mulf %209, %209 : vector<5x32xf32>
    %cst_84 = arith.constant dense<0.000000e+00> : vector<5xf32>
    %211 = vector.multi_reduction <add>, %210, %cst_84 [1] : vector<5x32xf32> to vector<5xf32>
    %212 = vector.shape_cast %211 : vector<5xf32> to vector<5x1xf32>
    %cst_85 = arith.constant 3.200000e+01 : f32
    %213 = vector.broadcast %cst_85 : f32 to vector<5x1xf32>
    %214 = arith.divf %212, %213 : vector<5x1xf32>
    %215 = vector.broadcast %207 : vector<5x1xf32> to vector<5x32xf32>
    %216 = arith.subf %201, %215 : vector<5x32xf32>
    %cst_86 = arith.constant 9.99999996E-13 : f32
    %217 = vector.broadcast %cst_86 : f32 to vector<5x1xf32>
    %218 = arith.addf %214, %217 : vector<5x1xf32>
    %219 = math.rsqrt %218 : vector<5x1xf32>
    %220 = vector.broadcast %219 : vector<5x1xf32> to vector<5x32xf32>
    %221 = arith.mulf %216, %220 : vector<5x32xf32>
    %222 = vector.broadcast %202 : vector<1x32xf32> to vector<5x32xf32>
    %223 = arith.mulf %221, %222 : vector<5x32xf32>
    %224 = vector.broadcast %203 : vector<1x32xf32> to vector<5x32xf32>
    %225 = arith.addf %223, %224 : vector<5x32xf32>
    %c1 = arith.constant 1 : index
    %c0_87 = arith.constant 0 : index
    %c0_88 = arith.constant 0 : index
    %226 = vector.load %arg6[%c1, %c0_87, %c0_88] : memref<2x32x96xf32, #tpu.memory_space<vmem>>, vector<1x32x96xf32>
    %227 = vector.shape_cast %226 : vector<1x32x96xf32> to vector<32x96xf32>
    %cst_89 = arith.constant dense<0.000000e+00> : vector<5x96xf32>
    %228 = tpu.matmul %225, %227, %cst_89 {dimension_numbers = #tpu.dot_dimension_numbers<[1], [0], [0], [1], [0, 0, 1, 1], [], []>} : vector<5x32xf32>, vector<32x96xf32>, vector<5x96xf32> -> vector<5x96xf32>
    %229 = vector.extract_strided_slice %8 {offsets = [1, 0], sizes = [1, 96], strides = [1, 1]} : vector<2x96xf32> to vector<1x96xf32>
    %230 = vector.broadcast %229 : vector<1x96xf32> to vector<5x96xf32>
    %231 = arith.addf %228, %230 : vector<5x96xf32>
    %c1_90 = arith.constant 1 : index
    %c0_91 = arith.constant 0 : index
    %c0_92 = arith.constant 0 : index
    %232 = vector.load %arg8[%c1_90, %c0_91, %c0_92] : memref<2x32x32xf32, #tpu.memory_space<vmem>>, vector<1x32x32xf32>
    %233 = vector.shape_cast %232 : vector<1x32x32xf32> to vector<32x32xf32>
    %234 = vector.extract_strided_slice %231 {offsets = [0, 0], sizes = [5, 8], strides = [1, 1]} : vector<5x96xf32> to vector<5x8xf32>
    %235 = vector.extract_strided_slice %231 {offsets = [0, 32], sizes = [5, 8], strides = [1, 1]} : vector<5x96xf32> to vector<5x8xf32>
    %236 = vector.extract_strided_slice %231 {offsets = [0, 64], sizes = [5, 8], strides = [1, 1]} : vector<5x96xf32> to vector<5x8xf32>
    %237 = tpu.transpose %235, [1, 0] : vector<5x8xf32> -> vector<8x5xf32>
    %cst_93 = arith.constant dense<0.000000e+00> : vector<5x5xf32>
    %238 = tpu.matmul %234, %237, %cst_93 {dimension_numbers = #tpu.dot_dimension_numbers<[1], [0], [0], [1], [0, 0, 1, 1], [], []>} : vector<5x8xf32>, vector<8x5xf32>, vector<5x5xf32> -> vector<5x5xf32>
    %cst_94 = arith.constant dense<0xFF800000> : vector<5xf32>
    %239 = vector.multi_reduction <maximumf>, %238, %cst_94 [1] : vector<5x5xf32> to vector<5xf32>
    %240 = vector.shape_cast %239 : vector<5xf32> to vector<5x1xf32>
    %241 = vector.broadcast %240 : vector<5x1xf32> to vector<5x5xf32>
    %242 = arith.subf %238, %241 : vector<5x5xf32>
    %243 = math.exp %242 : vector<5x5xf32>
    %cst_95 = arith.constant dense<0.000000e+00> : vector<5xf32>
    %244 = vector.multi_reduction <add>, %243, %cst_95 [1] : vector<5x5xf32> to vector<5xf32>
    %245 = vector.shape_cast %244 : vector<5xf32> to vector<5x1xf32>
    %246 = tpu.reciprocal %245 {approx = true} : vector<5x1xf32> -> vector<5x1xf32>
    %247 = vector.broadcast %246 : vector<5x1xf32> to vector<5x5xf32>
    %248 = arith.mulf %243, %247 : vector<5x5xf32>
    %cst_96 = arith.constant dense<0.000000e+00> : vector<5x8xf32>
    %249 = tpu.matmul %248, %236, %cst_96 {dimension_numbers = #tpu.dot_dimension_numbers<[1], [0], [0], [1], [0, 0, 1, 1], [], []>} : vector<5x5xf32>, vector<5x8xf32>, vector<5x8xf32> -> vector<5x8xf32>
    %250 = vector.extract_strided_slice %233 {offsets = [0, 0], sizes = [8, 32], strides = [1, 1]} : vector<32x32xf32> to vector<8x32xf32>
    %cst_97 = arith.constant dense<0.000000e+00> : vector<5x32xf32>
    %251 = tpu.matmul %249, %250, %cst_97 {dimension_numbers = #tpu.dot_dimension_numbers<[1], [0], [0], [1], [0, 0, 1, 1], [], []>} : vector<5x8xf32>, vector<8x32xf32>, vector<5x32xf32> -> vector<5x32xf32>
    %252 = vector.extract_strided_slice %231 {offsets = [0, 8], sizes = [5, 8], strides = [1, 1]} : vector<5x96xf32> to vector<5x8xf32>
    %253 = vector.extract_strided_slice %231 {offsets = [0, 40], sizes = [5, 8], strides = [1, 1]} : vector<5x96xf32> to vector<5x8xf32>
    %254 = vector.extract_strided_slice %231 {offsets = [0, 72], sizes = [5, 8], strides = [1, 1]} : vector<5x96xf32> to vector<5x8xf32>
    %255 = tpu.transpose %253, [1, 0] : vector<5x8xf32> -> vector<8x5xf32>
    %cst_98 = arith.constant dense<0.000000e+00> : vector<5x5xf32>
    %256 = tpu.matmul %252, %255, %cst_98 {dimension_numbers = #tpu.dot_dimension_numbers<[1], [0], [0], [1], [0, 0, 1, 1], [], []>} : vector<5x8xf32>, vector<8x5xf32>, vector<5x5xf32> -> vector<5x5xf32>
    %cst_99 = arith.constant dense<0xFF800000> : vector<5xf32>
    %257 = vector.multi_reduction <maximumf>, %256, %cst_99 [1] : vector<5x5xf32> to vector<5xf32>
    %258 = vector.shape_cast %257 : vector<5xf32> to vector<5x1xf32>
    %259 = vector.broadcast %258 : vector<5x1xf32> to vector<5x5xf32>
    %260 = arith.subf %256, %259 : vector<5x5xf32>
    %261 = math.exp %260 : vector<5x5xf32>
    %cst_100 = arith.constant dense<0.000000e+00> : vector<5xf32>
    %262 = vector.multi_reduction <add>, %261, %cst_100 [1] : vector<5x5xf32> to vector<5xf32>
    %263 = vector.shape_cast %262 : vector<5xf32> to vector<5x1xf32>
    %264 = tpu.reciprocal %263 {approx = true} : vector<5x1xf32> -> vector<5x1xf32>
    %265 = vector.broadcast %264 : vector<5x1xf32> to vector<5x5xf32>
    %266 = arith.mulf %261, %265 : vector<5x5xf32>
    %cst_101 = arith.constant dense<0.000000e+00> : vector<5x8xf32>
    %267 = tpu.matmul %266, %254, %cst_101 {dimension_numbers = #tpu.dot_dimension_numbers<[1], [0], [0], [1], [0, 0, 1, 1], [], []>} : vector<5x5xf32>, vector<5x8xf32>, vector<5x8xf32> -> vector<5x8xf32>
    %268 = vector.extract_strided_slice %233 {offsets = [8, 0], sizes = [8, 32], strides = [1, 1]} : vector<32x32xf32> to vector<8x32xf32>
    %cst_102 = arith.constant dense<0.000000e+00> : vector<5x32xf32>
    %269 = tpu.matmul %267, %268, %cst_102 {dimension_numbers = #tpu.dot_dimension_numbers<[1], [0], [0], [1], [0, 0, 1, 1], [], []>} : vector<5x8xf32>, vector<8x32xf32>, vector<5x32xf32> -> vector<5x32xf32>
    %270 = arith.addf %251, %269 : vector<5x32xf32>
    %271 = vector.extract_strided_slice %231 {offsets = [0, 16], sizes = [5, 8], strides = [1, 1]} : vector<5x96xf32> to vector<5x8xf32>
    %272 = vector.extract_strided_slice %231 {offsets = [0, 48], sizes = [5, 8], strides = [1, 1]} : vector<5x96xf32> to vector<5x8xf32>
    %273 = vector.extract_strided_slice %231 {offsets = [0, 80], sizes = [5, 8], strides = [1, 1]} : vector<5x96xf32> to vector<5x8xf32>
    %274 = tpu.transpose %272, [1, 0] : vector<5x8xf32> -> vector<8x5xf32>
    %cst_103 = arith.constant dense<0.000000e+00> : vector<5x5xf32>
    %275 = tpu.matmul %271, %274, %cst_103 {dimension_numbers = #tpu.dot_dimension_numbers<[1], [0], [0], [1], [0, 0, 1, 1], [], []>} : vector<5x8xf32>, vector<8x5xf32>, vector<5x5xf32> -> vector<5x5xf32>
    %cst_104 = arith.constant dense<0xFF800000> : vector<5xf32>
    %276 = vector.multi_reduction <maximumf>, %275, %cst_104 [1] : vector<5x5xf32> to vector<5xf32>
    %277 = vector.shape_cast %276 : vector<5xf32> to vector<5x1xf32>
    %278 = vector.broadcast %277 : vector<5x1xf32> to vector<5x5xf32>
    %279 = arith.subf %275, %278 : vector<5x5xf32>
    %280 = math.exp %279 : vector<5x5xf32>
    %cst_105 = arith.constant dense<0.000000e+00> : vector<5xf32>
    %281 = vector.multi_reduction <add>, %280, %cst_105 [1] : vector<5x5xf32> to vector<5xf32>
    %282 = vector.shape_cast %281 : vector<5xf32> to vector<5x1xf32>
    %283 = tpu.reciprocal %282 {approx = true} : vector<5x1xf32> -> vector<5x1xf32>
    %284 = vector.broadcast %283 : vector<5x1xf32> to vector<5x5xf32>
    %285 = arith.mulf %280, %284 : vector<5x5xf32>
    %cst_106 = arith.constant dense<0.000000e+00> : vector<5x8xf32>
    %286 = tpu.matmul %285, %273, %cst_106 {dimension_numbers = #tpu.dot_dimension_numbers<[1], [0], [0], [1], [0, 0, 1, 1], [], []>} : vector<5x5xf32>, vector<5x8xf32>, vector<5x8xf32> -> vector<5x8xf32>
    %287 = vector.extract_strided_slice %233 {offsets = [16, 0], sizes = [8, 32], strides = [1, 1]} : vector<32x32xf32> to vector<8x32xf32>
    %cst_107 = arith.constant dense<0.000000e+00> : vector<5x32xf32>
    %288 = tpu.matmul %286, %287, %cst_107 {dimension_numbers = #tpu.dot_dimension_numbers<[1], [0], [0], [1], [0, 0, 1, 1], [], []>} : vector<5x8xf32>, vector<8x32xf32>, vector<5x32xf32> -> vector<5x32xf32>
    %289 = arith.addf %270, %288 : vector<5x32xf32>
    %290 = vector.extract_strided_slice %231 {offsets = [0, 24], sizes = [5, 8], strides = [1, 1]} : vector<5x96xf32> to vector<5x8xf32>
    %291 = vector.extract_strided_slice %231 {offsets = [0, 56], sizes = [5, 8], strides = [1, 1]} : vector<5x96xf32> to vector<5x8xf32>
    %292 = vector.extract_strided_slice %231 {offsets = [0, 88], sizes = [5, 8], strides = [1, 1]} : vector<5x96xf32> to vector<5x8xf32>
    %293 = tpu.transpose %291, [1, 0] : vector<5x8xf32> -> vector<8x5xf32>
    %cst_108 = arith.constant dense<0.000000e+00> : vector<5x5xf32>
    %294 = tpu.matmul %290, %293, %cst_108 {dimension_numbers = #tpu.dot_dimension_numbers<[1], [0], [0], [1], [0, 0, 1, 1], [], []>} : vector<5x8xf32>, vector<8x5xf32>, vector<5x5xf32> -> vector<5x5xf32>
    %cst_109 = arith.constant dense<0xFF800000> : vector<5xf32>
    %295 = vector.multi_reduction <maximumf>, %294, %cst_109 [1] : vector<5x5xf32> to vector<5xf32>
    %296 = vector.shape_cast %295 : vector<5xf32> to vector<5x1xf32>
    %297 = vector.broadcast %296 : vector<5x1xf32> to vector<5x5xf32>
    %298 = arith.subf %294, %297 : vector<5x5xf32>
    %299 = math.exp %298 : vector<5x5xf32>
    %cst_110 = arith.constant dense<0.000000e+00> : vector<5xf32>
    %300 = vector.multi_reduction <add>, %299, %cst_110 [1] : vector<5x5xf32> to vector<5xf32>
    %301 = vector.shape_cast %300 : vector<5xf32> to vector<5x1xf32>
    %302 = tpu.reciprocal %301 {approx = true} : vector<5x1xf32> -> vector<5x1xf32>
    %303 = vector.broadcast %302 : vector<5x1xf32> to vector<5x5xf32>
    %304 = arith.mulf %299, %303 : vector<5x5xf32>
    %cst_111 = arith.constant dense<0.000000e+00> : vector<5x8xf32>
    %305 = tpu.matmul %304, %292, %cst_111 {dimension_numbers = #tpu.dot_dimension_numbers<[1], [0], [0], [1], [0, 0, 1, 1], [], []>} : vector<5x5xf32>, vector<5x8xf32>, vector<5x8xf32> -> vector<5x8xf32>
    %306 = vector.extract_strided_slice %233 {offsets = [24, 0], sizes = [8, 32], strides = [1, 1]} : vector<32x32xf32> to vector<8x32xf32>
    %cst_112 = arith.constant dense<0.000000e+00> : vector<5x32xf32>
    %307 = tpu.matmul %305, %306, %cst_112 {dimension_numbers = #tpu.dot_dimension_numbers<[1], [0], [0], [1], [0, 0, 1, 1], [], []>} : vector<5x8xf32>, vector<8x32xf32>, vector<5x32xf32> -> vector<5x32xf32>
    %308 = arith.addf %289, %307 : vector<5x32xf32>
    %309 = arith.addf %201, %308 : vector<5x32xf32>
    %310 = vector.extract_strided_slice %9 {offsets = [1, 0], sizes = [1, 32], strides = [1, 1]} : vector<2x32xf32> to vector<1x32xf32>
    %311 = vector.broadcast %310 : vector<1x32xf32> to vector<5x32xf32>
    %312 = arith.addf %309, %311 : vector<5x32xf32>
    %313 = vector.extract_strided_slice %10 {offsets = [1, 0], sizes = [1, 32], strides = [1, 1]} : vector<2x32xf32> to vector<1x32xf32>
    %314 = vector.extract_strided_slice %11 {offsets = [1, 0], sizes = [1, 32], strides = [1, 1]} : vector<2x32xf32> to vector<1x32xf32>
    %cst_113 = arith.constant dense<0.000000e+00> : vector<5xf32>
    %315 = vector.multi_reduction <add>, %312, %cst_113 [1] : vector<5x32xf32> to vector<5xf32>
    %316 = vector.shape_cast %315 : vector<5xf32> to vector<5x1xf32>
    %cst_114 = arith.constant 3.200000e+01 : f32
    %317 = vector.broadcast %cst_114 : f32 to vector<5x1xf32>
    %318 = arith.divf %316, %317 : vector<5x1xf32>
    %319 = vector.broadcast %318 : vector<5x1xf32> to vector<5x32xf32>
    %320 = arith.subf %312, %319 : vector<5x32xf32>
    %321 = arith.mulf %320, %320 : vector<5x32xf32>
    %cst_115 = arith.constant dense<0.000000e+00> : vector<5xf32>
    %322 = vector.multi_reduction <add>, %321, %cst_115 [1] : vector<5x32xf32> to vector<5xf32>
    %323 = vector.shape_cast %322 : vector<5xf32> to vector<5x1xf32>
    %cst_116 = arith.constant 3.200000e+01 : f32
    %324 = vector.broadcast %cst_116 : f32 to vector<5x1xf32>
    %325 = arith.divf %323, %324 : vector<5x1xf32>
    %326 = vector.broadcast %318 : vector<5x1xf32> to vector<5x32xf32>
    %327 = arith.subf %312, %326 : vector<5x32xf32>
    %cst_117 = arith.constant 9.99999996E-13 : f32
    %328 = vector.broadcast %cst_117 : f32 to vector<5x1xf32>
    %329 = arith.addf %325, %328 : vector<5x1xf32>
    %330 = math.rsqrt %329 : vector<5x1xf32>
    %331 = vector.broadcast %330 : vector<5x1xf32> to vector<5x32xf32>
    %332 = arith.mulf %327, %331 : vector<5x32xf32>
    %333 = vector.broadcast %313 : vector<1x32xf32> to vector<5x32xf32>
    %334 = arith.mulf %332, %333 : vector<5x32xf32>
    %335 = vector.broadcast %314 : vector<1x32xf32> to vector<5x32xf32>
    %336 = arith.addf %334, %335 : vector<5x32xf32>
    %c1_118 = arith.constant 1 : index
    %c0_119 = arith.constant 0 : index
    %c0_120 = arith.constant 0 : index
    %337 = vector.load %arg12[%c1_118, %c0_119, %c0_120] : memref<2x32x64xf32, #tpu.memory_space<vmem>>, vector<1x32x64xf32>
    %338 = vector.shape_cast %337 : vector<1x32x64xf32> to vector<32x64xf32>
    %cst_121 = arith.constant dense<0.000000e+00> : vector<5x64xf32>
    %339 = tpu.matmul %336, %338, %cst_121 {dimension_numbers = #tpu.dot_dimension_numbers<[1], [0], [0], [1], [0, 0, 1, 1], [], []>} : vector<5x32xf32>, vector<32x64xf32>, vector<5x64xf32> -> vector<5x64xf32>
    %340 = vector.extract_strided_slice %12 {offsets = [1, 0], sizes = [1, 64], strides = [1, 1]} : vector<2x64xf32> to vector<1x64xf32>
    %341 = vector.broadcast %340 : vector<1x64xf32> to vector<5x64xf32>
    %342 = arith.addf %339, %341 : vector<5x64xf32>
    %cst_122 = arith.constant 5.000000e-01 : f32
    %343 = vector.broadcast %cst_122 : f32 to vector<5x64xf32>
    %344 = arith.mulf %343, %342 : vector<5x64xf32>
    %cst_123 = arith.constant 0.707106769 : f32
    %345 = vector.broadcast %cst_123 : f32 to vector<5x64xf32>
    %346 = arith.mulf %342, %345 : vector<5x64xf32>
    %347 = math.absf %346 : vector<5x64xf32>
    %cst_124 = arith.constant 0.327591091 : f32
    %348 = vector.broadcast %cst_124 : f32 to vector<5x64xf32>
    %349 = arith.mulf %348, %347 : vector<5x64xf32>
    %cst_125 = arith.constant 1.000000e+00 : f32
    %350 = vector.broadcast %cst_125 : f32 to vector<5x64xf32>
    %351 = arith.addf %350, %349 : vector<5x64xf32>
    %cst_126 = arith.constant 1.000000e+00 : f32
    %352 = vector.broadcast %cst_126 : f32 to vector<5x64xf32>
    %353 = arith.divf %352, %351 : vector<5x64xf32>
    %cst_127 = arith.constant 1.06140542 : f32
    %354 = vector.broadcast %cst_127 : f32 to vector<5x64xf32>
    %355 = arith.mulf %354, %353 : vector<5x64xf32>
    %cst_128 = arith.constant -1.45315206 : f32
    %356 = vector.broadcast %cst_128 : f32 to vector<5x64xf32>
    %357 = arith.addf %355, %356 : vector<5x64xf32>
    %358 = arith.mulf %357, %353 : vector<5x64xf32>
    %cst_129 = arith.constant 1.42141378 : f32
    %359 = vector.broadcast %cst_129 : f32 to vector<5x64xf32>
    %360 = arith.addf %358, %359 : vector<5x64xf32>
    %361 = arith.mulf %360, %353 : vector<5x64xf32>
    %cst_130 = arith.constant -0.284496725 : f32
    %362 = vector.broadcast %cst_130 : f32 to vector<5x64xf32>
    %363 = arith.addf %361, %362 : vector<5x64xf32>
    %364 = arith.mulf %363, %353 : vector<5x64xf32>
    %cst_131 = arith.constant 0.254829586 : f32
    %365 = vector.broadcast %cst_131 : f32 to vector<5x64xf32>
    %366 = arith.addf %364, %365 : vector<5x64xf32>
    %367 = arith.mulf %366, %353 : vector<5x64xf32>
    %cst_132 = arith.constant 0.000000e+00 : f32
    %368 = vector.broadcast %cst_132 : f32 to vector<5x64xf32>
    %369 = arith.subf %368, %347 : vector<5x64xf32>
    %370 = arith.mulf %369, %347 : vector<5x64xf32>
    %371 = math.exp %370 : vector<5x64xf32>
    %372 = arith.mulf %367, %371 : vector<5x64xf32>
    %cst_133 = arith.constant 1.000000e+00 : f32
    %373 = vector.broadcast %cst_133 : f32 to vector<5x64xf32>
    %374 = arith.subf %373, %372 : vector<5x64xf32>
    %cst_134 = arith.constant 0.000000e+00 : f32
    %375 = vector.broadcast %cst_134 : f32 to vector<5x64xf32>
    %376 = arith.cmpf oge, %346, %375 : vector<5x64xf32>
    %cst_135 = arith.constant 0.000000e+00 : f32
    %377 = vector.broadcast %cst_135 : f32 to vector<5x64xf32>
    %378 = arith.subf %377, %374 : vector<5x64xf32>
    %379 = arith.select %376, %374, %378 : vector<5x64xi1>, vector<5x64xf32>
    %cst_136 = arith.constant 1.000000e+00 : f32
    %380 = vector.broadcast %cst_136 : f32 to vector<5x64xf32>
    %381 = arith.addf %380, %379 : vector<5x64xf32>
    %382 = arith.mulf %344, %381 : vector<5x64xf32>
    %c1_137 = arith.constant 1 : index
    %c0_138 = arith.constant 0 : index
    %c0_139 = arith.constant 0 : index
    %383 = vector.load %arg14[%c1_137, %c0_138, %c0_139] : memref<2x64x32xf32, #tpu.memory_space<vmem>>, vector<1x64x32xf32>
    %384 = vector.shape_cast %383 : vector<1x64x32xf32> to vector<64x32xf32>
    %cst_140 = arith.constant dense<0.000000e+00> : vector<5x32xf32>
    %385 = tpu.matmul %382, %384, %cst_140 {dimension_numbers = #tpu.dot_dimension_numbers<[1], [0], [0], [1], [0, 0, 1, 1], [], []>} : vector<5x64xf32>, vector<64x32xf32>, vector<5x32xf32> -> vector<5x32xf32>
    %386 = arith.addf %312, %385 : vector<5x32xf32>
    %387 = vector.extract_strided_slice %13 {offsets = [1, 0], sizes = [1, 32], strides = [1, 1]} : vector<2x32xf32> to vector<1x32xf32>
    %388 = vector.broadcast %387 : vector<1x32xf32> to vector<5x32xf32>
    %389 = arith.addf %386, %388 : vector<5x32xf32>
    %c0_141 = arith.constant 0 : index
    %c0_142 = arith.constant 0 : index
    %390 = vector.load %arg16[%c0_141, %c0_142] : memref<1x32xf32, #tpu.memory_space<vmem>>, vector<1x32xf32>
    %c0_143 = arith.constant 0 : index
    %c0_144 = arith.constant 0 : index
    %391 = vector.load %arg17[%c0_143, %c0_144] : memref<1x32xf32, #tpu.memory_space<vmem>>, vector<1x32xf32>
    %cst_145 = arith.constant dense<0.000000e+00> : vector<5xf32>
    %392 = vector.multi_reduction <add>, %389, %cst_145 [1] : vector<5x32xf32> to vector<5xf32>
    %393 = vector.shape_cast %392 : vector<5xf32> to vector<5x1xf32>
    %cst_146 = arith.constant 3.200000e+01 : f32
    %394 = vector.broadcast %cst_146 : f32 to vector<5x1xf32>
    %395 = arith.divf %393, %394 : vector<5x1xf32>
    %396 = vector.broadcast %395 : vector<5x1xf32> to vector<5x32xf32>
    %397 = arith.subf %389, %396 : vector<5x32xf32>
    %398 = arith.mulf %397, %397 : vector<5x32xf32>
    %cst_147 = arith.constant dense<0.000000e+00> : vector<5xf32>
    %399 = vector.multi_reduction <add>, %398, %cst_147 [1] : vector<5x32xf32> to vector<5xf32>
    %400 = vector.shape_cast %399 : vector<5xf32> to vector<5x1xf32>
    %cst_148 = arith.constant 3.200000e+01 : f32
    %401 = vector.broadcast %cst_148 : f32 to vector<5x1xf32>
    %402 = arith.divf %400, %401 : vector<5x1xf32>
    %403 = vector.broadcast %395 : vector<5x1xf32> to vector<5x32xf32>
    %404 = arith.subf %389, %403 : vector<5x32xf32>
    %cst_149 = arith.constant 9.99999996E-13 : f32
    %405 = vector.broadcast %cst_149 : f32 to vector<5x1xf32>
    %406 = arith.addf %402, %405 : vector<5x1xf32>
    %407 = math.rsqrt %406 : vector<5x1xf32>
    %408 = vector.broadcast %407 : vector<5x1xf32> to vector<5x32xf32>
    %409 = arith.mulf %404, %408 : vector<5x32xf32>
    %410 = vector.broadcast %390 : vector<1x32xf32> to vector<5x32xf32>
    %411 = arith.mulf %409, %410 : vector<5x32xf32>
    %412 = vector.broadcast %391 : vector<1x32xf32> to vector<5x32xf32>
    %413 = arith.addf %411, %412 : vector<5x32xf32>
    %414 = vector.extract_strided_slice %413 {offsets = [0, 0], sizes = [1, 32], strides = [1, 1]} : vector<5x32xf32> to vector<1x32xf32>
    %c0_150 = arith.constant 0 : index
    %c0_151 = arith.constant 0 : index
    %415 = vector.load %arg18[%c0_150, %c0_151] : memref<32x1xf32, #tpu.memory_space<vmem>>, vector<32x1xf32>
    %cst_152 = arith.constant dense<0.000000e+00> : vector<1x1xf32>
    %416 = tpu.matmul %414, %415, %cst_152 {dimension_numbers = #tpu.dot_dimension_numbers<[1], [0], [0], [1], [0, 0, 1, 1], [], []>} : vector<1x32xf32>, vector<32x1xf32>, vector<1x1xf32> -> vector<1x1xf32>
    %c0_153 = arith.constant 0 : index
    %c0_154 = arith.constant 0 : index
    %417 = vector.load %arg19[%c0_153, %c0_154] : memref<1x1xf32, #tpu.memory_space<vmem>>, vector<1x1xf32>
    %418 = arith.addf %416, %417 : vector<1x1xf32>
    %c0_155 = arith.constant 0 : index
    %c0_156 = arith.constant 0 : index
    %c0_157 = arith.constant 0 : index
    %419 = vector.load %arg20[%c0_155, %c0_156, %c0_157] : memref<1x1x1xf32, #tpu.memory_space<vmem>>, vector<1x1x1xf32>
    %420 = vector.shape_cast %419 : vector<1x1x1xf32> to vector<1x1xf32>
    %421 = vector.shape_cast %418 : vector<1x1xf32> to vector<1x1x1xf32>
    tpu.vector_store %arg20[%c0_155, %c0_156, %c0_157], %421 {strides = array<i32>} : memref<1x1x1xf32, #tpu.memory_space<vmem>>, vector<1x1x1xf32>,
    return
  }
  func.func @transform_0(%arg0: i32) -> (i32, i32, i32) {
    %c0_i32 = arith.constant 0 : i32
    %c0_i32_0 = arith.constant 0 : i32
    %c0_i32_1 = arith.constant 0 : i32
    return %arg0, %c0_i32, %c0_i32_0 : i32, i32, i32
  }
  func.func @transform_1(%arg0: i32) -> (i32, i32) {
    %c0_i32 = arith.constant 0 : i32
    %c0_i32_0 = arith.constant 0 : i32
    %c0_i32_1 = arith.constant 0 : i32
    return %c0_i32, %c0_i32_0 : i32, i32
  }
  func.func @transform_2(%arg0: i32) -> (i32, i32) {
    %c0_i32 = arith.constant 0 : i32
    %c0_i32_0 = arith.constant 0 : i32
    %c0_i32_1 = arith.constant 0 : i32
    return %c0_i32, %c0_i32_0 : i32, i32
  }
  func.func @transform_3(%arg0: i32) -> (i32, i32) {
    %c0_i32 = arith.constant 0 : i32
    %c0_i32_0 = arith.constant 0 : i32
    %c0_i32_1 = arith.constant 0 : i32
    return %c0_i32, %c0_i32_0 : i32, i32
  }
  func.func @transform_4(%arg0: i32) -> (i32, i32) {
    %c0_i32 = arith.constant 0 : i32
    %c0_i32_0 = arith.constant 0 : i32
    %c0_i32_1 = arith.constant 0 : i32
    return %c0_i32, %c0_i32_0 : i32, i32
  }
  func.func @transform_5(%arg0: i32) -> (i32, i32, i32) {
    %c0_i32 = arith.constant 0 : i32
    %c0_i32_0 = arith.constant 0 : i32
    %c0_i32_1 = arith.constant 0 : i32
    %c0_i32_2 = arith.constant 0 : i32
    return %c0_i32, %c0_i32_0, %c0_i32_1 : i32, i32, i32
  }
  func.func @transform_6(%arg0: i32) -> (i32, i32) {
    %c0_i32 = arith.constant 0 : i32
    %c0_i32_0 = arith.constant 0 : i32
    %c0_i32_1 = arith.constant 0 : i32
    return %c0_i32, %c0_i32_0 : i32, i32
  }
  func.func @transform_7(%arg0: i32) -> (i32, i32, i32) {
    %c0_i32 = arith.constant 0 : i32
    %c0_i32_0 = arith.constant 0 : i32
    %c0_i32_1 = arith.constant 0 : i32
    %c0_i32_2 = arith.constant 0 : i32
    return %c0_i32, %c0_i32_0, %c0_i32_1 : i32, i32, i32
  }
  func.func @transform_8(%arg0: i32) -> (i32, i32) {
    %c0_i32 = arith.constant 0 : i32
    %c0_i32_0 = arith.constant 0 : i32
    %c0_i32_1 = arith.constant 0 : i32
    return %c0_i32, %c0_i32_0 : i32, i32
  }
  func.func @transform_9(%arg0: i32) -> (i32, i32) {
    %c0_i32 = arith.constant 0 : i32
    %c0_i32_0 = arith.constant 0 : i32
    %c0_i32_1 = arith.constant 0 : i32
    return %c0_i32, %c0_i32_0 : i32, i32
  }
  func.func @transform_10(%arg0: i32) -> (i32, i32) {
    %c0_i32 = arith.constant 0 : i32
    %c0_i32_0 = arith.constant 0 : i32
    %c0_i32_1 = arith.constant 0 : i32
    return %c0_i32, %c0_i32_0 : i32, i32
  }
  func.func @transform_11(%arg0: i32) -> (i32, i32, i32) {
    %c0_i32 = arith.constant 0 : i32
    %c0_i32_0 = arith.constant 0 : i32
    %c0_i32_1 = arith.constant 0 : i32
    %c0_i32_2 = arith.constant 0 : i32
    return %c0_i32, %c0_i32_0, %c0_i32_1 : i32, i32, i32
  }
  func.func @transform_12(%arg0: i32) -> (i32, i32) {
    %c0_i32 = arith.constant 0 : i32
    %c0_i32_0 = arith.constant 0 : i32
    %c0_i32_1 = arith.constant 0 : i32
    return %c0_i32, %c0_i32_0 : i32, i32
  }
  func.func @transform_13(%arg0: i32) -> (i32, i32, i32) {
    %c0_i32 = arith.constant 0 : i32
    %c0_i32_0 = arith.constant 0 : i32
    %c0_i32_1 = arith.constant 0 : i32
    %c0_i32_2 = arith.constant 0 : i32
    return %c0_i32, %c0_i32_0, %c0_i32_1 : i32, i32, i32
  }
  func.func @transform_14(%arg0: i32) -> (i32, i32) {
    %c0_i32 = arith.constant 0 : i32
    %c0_i32_0 = arith.constant 0 : i32
    %c0_i32_1 = arith.constant 0 : i32
    return %c0_i32, %c0_i32_0 : i32, i32
  }
  func.func @transform_15(%arg0: i32) -> (i32, i32) {
    %c0_i32 = arith.constant 0 : i32
    %c0_i32_0 = arith.constant 0 : i32
    %c0_i32_1 = arith.constant 0 : i32
    return %c0_i32, %c0_i32_0 : i32, i32
  }
  func.func @transform_16(%arg0: i32) -> (i32, i32) {
    %c0_i32 = arith.constant 0 : i32
    %c0_i32_0 = arith.constant 0 : i32
    %c0_i32_1 = arith.constant 0 : i32
    return %c0_i32, %c0_i32_0 : i32, i32
  }
  func.func @transform_17(%arg0: i32) -> (i32, i32) {
    %c0_i32 = arith.constant 0 : i32
    %c0_i32_0 = arith.constant 0 : i32
    %c0_i32_1 = arith.constant 0 : i32
    return %c0_i32, %c0_i32_0 : i32, i32
  }
  func.func @transform_18(%arg0: i32) -> (i32, i32) {
    %c0_i32 = arith.constant 0 : i32
    %c0_i32_0 = arith.constant 0 : i32
    %c0_i32_1 = arith.constant 0 : i32
    return %c0_i32, %c0_i32_0 : i32, i32
  }
  func.func @transform_19(%arg0: i32) -> (i32, i32, i32) {
    %c0_i32 = arith.constant 0 : i32
    %c0_i32_0 = arith.constant 0 : i32
    %c0_i32_1 = arith.constant 0 : i32
    return %arg0, %c0_i32, %c0_i32_0 : i32, i32, i32
  }
}

</mosaic_0001>

<bundles_post_ra>
// kernel: vit_object_counter_forward.1
= control target key start
LH: loop header
LB: loop body
LE: loop exit
PB: predicated region body
PF: predicated region fallthrough
CT: control target
= control target key end

     0   :  { %s4073_s20 = smov 0   ;;  %s4680_s0 = inlined_call_operand.vmem [shape: f32[2,5,256], index: 0, kind: input, shape index: {}]   ;;  %s4681_s1 = inlined_call_operand.vmem [shape: f32[5,32], index: 1, kind: input, shape index: {}]   ;;  %s4682_s2 = inlined_call_operand.vmem [shape: f32[256,32], index: 2, kind: input, shape index: {}]   ;;  %s4683_s3 = inlined_call_operand.vmem [shape: f32[2,32], index: 3, kind: input, shape index: {}]   ;;  %s4684_s4 = inlined_call_operand.vmem [shape: f32[2,32], index: 4, kind: input, shape index: {}]   ;;  %s4685_s5 = inlined_call_operand.vmem [shape: f32[2,32,96], index: 5, kind: input, shape index: {}]   ;;  %s4686_s6 = inlined_call_operand.vmem [shape: f32[2,96], index: 6, kind: input, shape index: {}]   ;;  %s4687_s7 = inlined_call_operand.vmem [shape: f32[2,32,32], index: 7, kind: input, shape index: {}]   ;;  %s4688_s8 = inlined_call_operand.vmem [shape: f32[2,32], index: 8, kind: input, shape index: {}]   ;;  %s4689_s9 = inlined_call_operand.vmem [shape: f32[2,32], index: 9, kind: input, shape index: {}]   ;;  %s4690_s10 = inlined_call_operand.vmem [shape: f32[2,32], index: 10, kind: input, shape index: {}]   ;;  %s4691_s11 = inlined_call_operand.vmem [shape: f32[2,32,64], index: 11, kind: input, shape index: {}]   ;;  %s4692_s12 = inlined_call_operand.vmem [shape: f32[2,64], index: 12, kind: input, shape index: {}]   ;;  %s4693_s13 = inlined_call_operand.vmem [shape: f32[2,64,32], index: 13, kind: input, shape index: {}]   ;;  %s4694_s14 = inlined_call_operand.vmem [shape: f32[2,32], index: 14, kind: input, shape index: {}]   ;;  %s4695_s15 = inlined_call_operand.vmem [shape: f32[1,32], index: 15, kind: input, shape index: {}]   ;;  %s4696_s16 = inlined_call_operand.vmem [shape: f32[1,32], index: 16, kind: input, shape index: {}]   ;;  %s4697_s17 = inlined_call_operand.vmem [shape: f32[32,1], index: 17, kind: input, shape index: {}]   ;;  %s4698_s18 = inlined_call_operand.<no memory space> [shape: f32[1,1], index: 18, kind: input, shape index: {}]   ;;  %s4699_s19 = inlined_call_operand.vmem [shape: f32[2,1,1], index: 19, kind: output, shape index: {}]  }
   0x1   :  { %4707 = sst [smem:[#allocation3_spill]] %s4680_s0  ;;  %v24_v0 = vstv %s4698_s18 }
   0x2   :  { %4708 = sst [smem:[#allocation4_spill]] %s4681_s1  ;;  %25 = vst [vmem:[#allocation2] sm:$0x1] %v24_v0 }
   0x3   :  { %4709 = sst [smem:[#allocation5_spill]] %s4682_s2 }
   0x4   :  { %4710 = sst [smem:[#allocation6_spill]] %s4683_s3 }
   0x5 LB: > { %s3460_s21 = sadd.s32 4294967295, %s3955_s20   ;;  %p3464_p0 = scmp.ge.s32.totalorder %s3955_s20, 1  ;;  %s3955_s20 = sphi %s4073_s20, %s31_s20  }
   0x6   : > { %p539_p1 = scmp.lt.s32.totalorder %s3955_s20, 3 }
   0x8   : > { %p540_p2 = pnand %p3464_p0, %p539_p1 }
   0x9   : > { %s4711_s2 = sld [smem:[#allocation5_spill]] (!%p540_p2)  ;;  %p593_p3 = scmp.lt.s32.totalorder (!%p540_p2), %s3460_s21, 1 }
   0xa   : > { %543 = sbr.rel (%p540_p2) target bundleno = 7724 (0x1e2c), region = 96  ;;  %s4712_s29 = sld [smem:[#allocation3_spill]] (!%p540_p2) }
   0xb   : > { %s4713_s28 = sld [smem:[#allocation4_spill]] (!%p540_p2)  ;;  %s3959_s30 = smov (!%p540_p2), 64  }
   0xc   : > { %s4714_s26 = sld [smem:[#allocation6_spill]] (!%p540_p2)  ;;  %s3960_s1 = smov (!%p540_p2), 96  }
   0xd   : > { %s3961_s18 = smov (!%p540_p2), 80   ;;  %s3962_s23 = smov (!%p540_p2), 88  }
   0xe   : > { %s3963_s24 = smov (!%p540_p2), 120   ;;  %s4705_s25 = smov (!%p540_p2), 112  }
   0xf   : > { %v634_v1 = vld [vmem:[%s4711_s2 + $0xf8] sm:$0xff]  ;;  %v633_v3 = vld [vmem:[%s4711_s2 + $0xf0] sm:$0xff]  ;;  %v632_v5 = vld [vmem:[%s4711_s2 + $0xe8] sm:$0xff]  ;;  %s4722_s21 = smov (!%p593_p3, %s3460_s21), 1  ;;  %vm714_vm0 = vcmask 258048   ;;  %v3957_v47 = vmov 0.0   ;;  %v729_v54 = vlaneseq }
  0x10   : > { %v618_v2 = vld [vmem:[%s4711_s2 + $0x78] sm:$0xff]  ;;  %3539 = vmatprep.subr.mxu0 %v634_v1  ;;  %v617_v4 = vld [vmem:[%s4711_s2 + $0x70] sm:$0xff]  ;;  %v616_v6 = vld [vmem:[%s4711_s2 + $0x68] sm:$0xff]  ;;  %s3538_s22 = sshll.u32 %s4722_s21, 4  ;;  %3665 = vmatprep.subr.mxu1 %v3957_v47  ;;  %vm3958_vm1 = vmmov 0   ;;  %vm747_vm2 = vcmask 261120  }
  0x11   : > { %3540 = vmatpush3.msra.mxu0 %v618_v2  ;;  %v631_v7 = vld [vmem:[%s4711_s2 + $0xe0] sm:$0xff]  ;;  %v630_v9 = vld [vmem:[%s4711_s2 + $0xd8] sm:$0xff]  ;;  %s4117_s0 = scalar_lea.vmem %s4712_s29, %s3538_s22  ;;  %v629_v11 = vld [vmem:[%s4711_s2 + $0xd0] sm:$0xff]  ;;  %3673 = vmatprep.mubr.msk.f32.mxu1 %vm3958_vm1, %v3957_v47  ;;  %v4218_v55 = vshrl.u32 %v729_v54, 7  ;;  %vm828_vm3 = vcmask 64512   ;;  %vm921_vm4 = vcmask 1044480  }
  0x12   : > { %3541 = vmatprep.subr.mxu0 %v633_v3  ;;  %v615_v8 = vld [vmem:[%s4711_s2 + $0x60] sm:$0xff]  ;;  %v614_v10 = vld [vmem:[%s4711_s2 + $0x58] sm:$0xff]  ;;  %v613_v12 = vld [vmem:[%s4711_s2 + $0x50] sm:$0xff]  ;;  %vm903_vm5 = vcmask 36864   ;;  %vm917_vm6 = vcmask 39936   ;;  %s4706_s22 = smov 56  }
  0x13   : > { %3542 = vmatpush3.msra.mxu0 %v617_v4  ;;  %v628_v13 = vld [vmem:[%s4711_s2 + $0xc8] sm:$0xff]  ;;  %v627_v16 = vld [vmem:[%s4711_s2 + $0xc0] sm:$0xff]  ;;  %v626_v18 = vld [vmem:[%s4711_s2 + $0xb8] sm:$0xff]  ;;  %v4221_v56 = vsub.s32 0, %v4218_v55  ;;  %s4704_s3 = smov 48   ;;  %vm1931_vm8 = vcmask 523264  }
  0x14   : > { %3543 = vmatprep.subr.mxu0 %v632_v5  ;;  %v602_v14 = vld [vmem:[%s4117_s0 + $0x8] sm:$0x1f]  ;;  %v611_v17 = vld [vmem:[%s4711_s2 + $0x40] sm:$0xff]  ;;  %v610_v19 = vld [vmem:[%s4711_s2 + $0x38] sm:$0xff]  ;;  %s4720_s27 = smov 40   ;;  %vm3411_vm10 = vcmask 0  }
  0x15   : > { %3544 = vmatpush3.msra.mxu0 %v616_v6  ;;  %v612_v15 = vld [vmem:[%s4711_s2 + $0x48] sm:$0xff]  ;;  %700 = vmatprep.mubr.f32.mxu0 %v602_v14  ;;  %v625_v20 = vld [vmem:[%s4711_s2 + $0xb0] sm:$0xff]  ;;  %v623_v24 = vld [vmem:[%s4711_s2 + $0xa0] sm:$0xff] }
  0x16   : > { %3545 = vmatprep.subr.mxu0 %v631_v7  ;;  %v609_v21 = vld [vmem:[%s4711_s2 + $0x30] sm:$0xff]  ;;  %v624_v22 = vld [vmem:[%s4711_s2 + $0xa8] sm:$0xff]  ;;  %v607_v25 = vld [vmem:[%s4711_s2 + $0x20] sm:$0xff] }
  0x17   : > { %3546 = vmatpush3.msra.mxu0 %v615_v8  ;;  %v608_v23 = vld [vmem:[%s4711_s2 + $0x28] sm:$0xff]  ;;  %v622_v26 = vld [vmem:[%s4711_s2 + $0x98] sm:$0xff]  ;;  %v621_v28 = vld [vmem:[%s4711_s2 + $0x90] sm:$0xff] }
  0x18   : > { %3547 = vmatprep.subr.mxu0 %v630_v9  ;;  %v606_v27 = vld [vmem:[%s4711_s2 + $0x18] sm:$0xff]  ;;  %v605_v29 = vld [vmem:[%s4711_s2 + $0x10] sm:$0xff]  ;;  %v620_v30 = vld [vmem:[%s4711_s2 + $0x88] sm:$0xff] }
  0x19   : > { %3548 = vmatpush3.msra.mxu0 %v614_v10  ;;  %v604_v31 = vld [vmem:[%s4711_s2 + $0x8] sm:$0xff]  ;;  %v619_v32 = vld [vmem:[%s4711_s2 + $0x80] sm:$0xff]  ;;  %v742_v46 = vld [vmem:[%s4685_s5 + $0x18] sm:$0xff] }
  0x1a   : > { %3549 = vmatprep.subr.mxu0 %v629_v11  ;;  %v603_v33 = vld [vmem:[%s4711_s2] sm:$0xff]  ;;  %v741_v48 = vld [vmem:[%s4685_s5 + $0x10] sm:$0xff]  ;;  %3666 = vmatpush3.msra.mxu1 %v742_v46  ;;  %v740_v49 = vld [vmem:[%s4685_s5 + $0x8] sm:$0xff] }
  0x1b   : > { %3550 = vmatpush3.msra.mxu0 %v613_v12  ;;  %v601_v34 = vld [vmem:[%s4117_s0] sm:$0x1f]  ;;  %3667 = vmatprep.subr.mxu1 %v3957_v47  ;;  %v822_v46 = vld [vmem:[%s4687_s7 + $0x8] sm:$0xff]  ;;  %s4703_s0 = smov 72  }
  0x1c   : > { %3551 = vmatprep.subr.mxu0 %v628_v13  ;;  %v635_v36 = vld [vmem:[%s4713_s28] sm:$0x1f]  ;;  %3668 = vmatpush3.msra.mxu1 %v741_v48  ;;  %s4702_s28 = smov 40  }
  0x1d   : > { %3552 = vmatpush3.msra.mxu0 %v612_v15  ;;  %3669 = vmatprep.subr.mxu1 %v3957_v47  ;;  %v739_v50 = vld [vmem:[%s4685_s5] sm:$0xff] }
  0x1e   : > { %3553 = vmatprep.subr.mxu0 %v627_v16  ;;  %3670 = vmatpush3.msra.mxu1 %v740_v49  ;;  %v4226_v57 = vld [vmem:[%s4714_s26] sm:$0x3]  ;;  %s4701_s26 = smov 104  }
  0x1f   : > { %3554 = vmatpush3.msra.mxu0 %v611_v17  ;;  %3671 = vmatprep.subr.mxu1 %v3957_v47  ;;  %v4231_v58 = vld [vmem:[%s4684_s4] sm:$0x3]  ;;  %v732_v59 = vrot.slane %v4226_v57, %v4221_v56 }
  0x20   : > { %3555 = vmatprep.subr.mxu0 %v626_v18  ;;  %3672 = vmatpush3.msra.mxu1 %v739_v50  ;;  %v737_v62 = vrot.slane %v4231_v58, %v4221_v56  ;;  %v4243_v1 = vld [vmem:[%s4686_s6] sm:$0x3] }
  0x21   : > { %3556 = vmatpush3.msra.mxu0 %v610_v19  ;;  %3676 = vmatprep.subr.mxu1 %v3957_v47  ;;  %v746_v2 = vrot.slane %v4243_v1, %v4221_v56  ;;  %v821_v49 = vld [vmem:[%s4687_s7] sm:$0xff] }
  0x22   : > { %3557 = vmatprep.subr.mxu0 %v625_v20 }
  0x23   : > { %3558 = vmatpush3.msra.mxu0 %v609_v21 }
  0x24   : > { %3559 = vmatprep.subr.mxu0 %v624_v22 }
  0x25   : > { %3560 = vmatpush3.msra.mxu0 %v608_v23 }
  0x26   : > { %3561 = vmatprep.subr.mxu0 %v623_v24 }
  0x27   : > { %3562 = vmatpush3.msra.mxu0 %v607_v25 }
  0x28   : > { %3563 = vmatprep.subr.mxu0 %v622_v26 }
  0x29   : > { %3564 = vmatpush3.msra.mxu0 %v606_v27 }
  0x2a   : > { %3565 = vmatprep.subr.mxu0 %v621_v28 }
  0x2b   : > { %3566 = vmatpush3.msra.mxu0 %v605_v29 }
  0x2c   : > { %3567 = vmatprep.subr.mxu0 %v620_v30 }
  0x2d   : > { %3568 = vmatpush3.msra.mxu0 %v604_v31 }
  0x2e   : > { %3569 = vmatprep.subr.mxu0 %v619_v32 }
  0x2f   : > { %3570 = vmatpush3.msra.mxu0 %v603_v33 }
  0x30   : > { %701 = vmatmul.mubr.f32.vlgmr.msra.gmra.mxu0 %v601_v34  ;;  %3706 = vmatprep.subr.mxu0 %v3957_v47 }
  0x31   : > { %3708 = vmatprep.mubr.msk.f32.mxu0 %vm3958_vm1, %v3957_v47 }
  0xf0   : > { %v3571_v35 = vpop.f32.mrf.mxu0 }
  0xf2   : > { %v3572_v37 = vpop.f32.mrf.mxu0 }
  0xf3   : > { %v3573_v38 = vadd.f32 %v3572_v37, %v3571_v35 }
  0xf5   : > { %v4190_v39 = vadd.f32 %v3573_v38, %v635_v36 }
  0xf7   : > { %v715_v40 = vsel %vm714_vm0, %v4190_v39, 0.0 }
  0xf8   : > { %716 = vadd.xlane.f32.xlu0 %v715_v40 }
 0x181   : > { %v717_v41 = vpop.xlane.xlu0 %716 }
 0x182   : > { %v719_v42 = vmul.f32 0.03125, %v717_v41 }
 0x184   : > { %v720_v43 = vsub.f32 %v4190_v39, %v719_v42 }
 0x186   : > { %v721_v44 = vmul.f32 %v720_v43, %v720_v43 }
 0x188   : > { %v722_v45 = vsel %vm714_vm0, %v721_v44, 0.0 }
 0x189   : > { %723 = vadd.xlane.f32.xlu0 %v722_v45 }
 0x212   : > { %v724_v51 = vpop.xlane.xlu0 %723 }
 0x213   : > { %v725_v52 = vmul.f32 0.03125, %v724_v51 }
 0x215   : > { %v726_v53 = vadd.f32 1e-12, %v725_v52 }
 0x217   : > { %3899 = vrsqrt.f32 %v726_v53 }
 0x224   : > { %v3900_v60 = vpop.eup %3899 }
 0x225   : > { %v728_v61 = vmul.f32 %v3900_v60, %v720_v43 }
 0x227   : > { %v733_v63 = vmul.f32 %v732_v59, %v728_v61  ;;  %v823_v61 = vld [vmem:[%s4687_s7 + $0x10] sm:$0xff] }
 0x229   : > { %v738_v0 = vadd.f32 %v737_v62, %v733_v63 }
 0x22b   : > { %3674 = vmatmul.mubr.msk.f32.vlgmr.msra.gmra.mxu1 %vm747_vm2, %v738_v0 }
 0x22c   : > { %3678 = vmatprep.mubr.msk.f32.mxu1 %vm3958_vm1, %v3957_v47 }
 0x2eb   : > { %v817_v3 = vpop.f32.mrf.mxu1 }
 0x2ec   : > { %v4247_v4 = vadd.f32 %v817_v3, %v746_v2 }
 0x2ed   : > { %v3675_v5 = vpop.f32.mrf.mxu1 }
 0x2ee   : > { %915 = vrot.lane.b32.xlu0 %v4247_v4, %s3959_s30  ;;  %826 = vrot.lane.b32.xlu1 %v4247_v4, %s3960_s1 }
 0x360   : > { %v827_v6 = vpop.permute.xlu1 %826  ;;  %v916_v7 = vpop.permute.xlu0 %915 }
 0x361   : > { %3677 = vmatpush3.xpose.msk.msra.mxu1 %vm828_vm3, %v827_v6 }
 0x362   : > { %3681 = vmatprep.subr.mxu1 %v3957_v47 }
 0x364   : > { %3679 = vmatmul.mubr.msk.f32.vlgmr.msra.gmra.mxu1 %vm828_vm3, %v4247_v4 }
 0x365   : > { %3682 = vmatpush3.msk.msra.mxu1 %vm921_vm4, %v916_v7  ;;  %3683 = vmatprep.mubr.msk.f32.mxu1 %vm3958_vm1, %v3957_v47 }
 0x366   : > { %3686 = vmatprep.subr.mxu1 %v3957_v47 }
 0x424   : > { %v899_v8 = vpop.f32.mrf.mxu1 }
 0x425   : > { %v904_v9 = vsel %vm903_vm5, %v899_v8, -inf }
 0x426   : > { %905 = vmax.xlane.f32.xlu1 %v904_v9  ;;  %v3680_v10 = vpop.f32.mrf.mxu1 }
 0x437   : > { %1308 = vrot.lane.b32.xlu1 %v4247_v4, %s3961_s18 }
 0x4af   : > { %v906_v11 = vpop.xlane.xlu1 %905 }
 0x4b0   : > { %v907_v12 = vsub.f32 %v899_v8, %v906_v11 }
 0x4b2   : > { %v908_v13 = vmul.f32 1.442695, %v907_v12 }
 0x4b3   : > { %v1309_v14 = vpop.permute.xlu1 %1308 }
 0x4b4   : > { %3901 = vpow2.f32 %v908_v13  ;;  %3707 = vmatpush3.xpose.msk.msra.mxu0 %vm828_vm3, %v1309_v14 }
 0x4b5   : > { %3716 = vmatprep.subr.mxu0 %v3957_v47 }
 0x4c1   : > { %v3902_v15 = vpop.eup %3901 }
 0x4c2   : > { %v910_v16 = vsel %vm903_vm5, %v3902_v15, 0.0 }
 0x4c3   : > { %911 = vadd.xlane.f32.xlu0 %v910_v16  ;;  %v824_v16 = vld [vmem:[%s4687_s7 + $0x18] sm:$0xff] }
 0x4d9   : > { %996 = vrot.lane.b32.xlu0 %v4247_v4, %s3962_s23 }
 0x4dd   : > { %994 = vrot.lane.b32.xlu0 %v4247_v4, %s3963_s24 }
 0x4e1   : > { %1306 = vrot.lane.b32.xlu0 %v4247_v4, %s4705_s25 }
 0x54c   : > { %v912_v17 = vpop.xlane.xlu0 %911 }
 0x54d   : > { %3903 = vrcp.f32 %v912_v17 }
 0x550   : > { %v997_v18 = vpop.permute.xlu0 %996 }
 0x554   : > { %v995_v19 = vpop.permute.xlu0 %994 }
 0x558   : > { %v1307_v20 = vpop.permute.xlu0 %1306 }
 0x559   : > { %3709 = vmatmul.mubr.msk.f32.vlgmr.msra.gmra.mxu0 %vm828_vm3, %v1307_v20 }
 0x55a   : > { %v3904_v21 = vpop.eup %3903  ;;  %3718 = vmatprep.mubr.msk.f32.mxu0 %vm3958_vm1, %v3957_v47  ;;  %3717 = vmatpush3.msra.mxu0 %v823_v61  ;;  %v1926_v61 = vld [vmem:[%s4693_s13 + $0x18] sm:$0xff] }
 0x55b   : > { %v914_v22 = vmul.f32 %v3904_v21, %v3902_v15  ;;  %3726 = vmatprep.subr.mxu0 %v3957_v47 }
 0x55d   : > { %3684 = vmatmul.mubr.msk.f32.vlgmr.msra.gmra.mxu1 %vm917_vm6, %v914_v22 }
 0x55e   : > { %3687 = vmatpush3.xpose.msk.msra.mxu1 %vm828_vm3, %v997_v18  ;;  %3688 = vmatprep.mubr.msk.f32.mxu1 %vm3958_vm1, %v3957_v47 }
 0x55f   : > { %3691 = vmatprep.subr.mxu1 %v3957_v47 }
 0x561   : > { %3689 = vmatmul.mubr.msk.f32.vlgmr.msra.gmra.mxu1 %vm828_vm3, %v995_v19 }
 0x562   : > { %3693 = vmatprep.mubr.msk.f32.mxu1 %vm3958_vm1, %v3957_v47 }
 0x619   : > { %v1380_v23 = vpop.f32.mrf.mxu0 }
 0x61a   : > { %v1384_v36 = vsel %vm903_vm5, %v1380_v23, -inf }
 0x61b   : > { %v3710_v24 = vpop.f32.mrf.mxu0 }
 0x61c   : > { %v4351_v24 = vld [vmem:[%s4688_s8] sm:$0x3] }
 0x61d   : > { %v990_v25 = vpop.f32.mrf.mxu1 }
 0x61f   : > { %v3685_v26 = vpop.f32.mrf.mxu1 }
 0x621   : > { %v1068_v27 = vpop.f32.mrf.mxu1 }
 0x622   : > { %v1072_v28 = vsel %vm903_vm5, %v1068_v27, -inf }
 0x623   : > { %1073 = vmax.xlane.f32.xlu0 %v1072_v28  ;;  %v3690_v29 = vpop.f32.mrf.mxu1 }
 0x639   : > { %1083 = vrot.lane.b32.xlu0 %v4247_v4, %s4706_s22 }
 0x63d   : > { %1395 = vrot.lane.b32.xlu0 %v4247_v4, %s4704_s3  ;;  %s4717_s3 = smov 48  }
 0x641   : > { %1546 = vrot.lane.b32.xlu0 %v4247_v4, %s4701_s26  ;;  %s4719_s26 = smov 72  }
 0x6ac   : > { %v1074_v30 = vpop.xlane.xlu0 %1073 }
 0x6ad   : > { %v1075_v31 = vsub.f32 %v1068_v27, %v1074_v30  ;;  %v1790_v27 = vrot.slane %v4351_v24, %v4221_v56 }
 0x6af   : > { %v1076_v32 = vmul.f32 1.442695, %v1075_v31 }
 0x6b0   : > { %v1084_v33 = vpop.permute.xlu0 %1083 }
 0x6b1   : > { %3905 = vpow2.f32 %v1076_v32  ;;  %3692 = vmatpush3.msk.msra.mxu1 %vm921_vm4, %v1084_v33 }
 0x6b2   : > { %3696 = vmatprep.subr.mxu1 %v3957_v47 }
 0x6b4   : > { %v1396_v53 = vpop.permute.xlu0 %1395 }
 0x6b8   : > { %v1547_v60 = vpop.permute.xlu0 %1546 }
 0x6be   : > { %v3906_v34 = vpop.eup %3905 }
 0x6bf   : > { %v1078_v35 = vsel %vm903_vm5, %v3906_v34, 0.0 }
 0x6c0   : > { %1079 = vadd.xlane.f32.xlu1 %v1078_v35 }
 0x6c4   : > { %1385 = vmax.xlane.f32.xlu1 %v1384_v36 }
 0x749   : > { %v1080_v37 = vpop.xlane.xlu1 %1079 }
 0x74a   : > { %3907 = vrcp.f32 %v1080_v37  ;;  %v1818_v37 = vld [vmem:[%s4691_s11 + $0x18] sm:$0xff] }
 0x74d   : > { %v1386_v38 = vpop.xlane.xlu1 %1385 }
 0x74e   : > { %v1387_v40 = vsub.f32 %v1380_v23, %v1386_v38  ;;  %v1816_v38 = vld [vmem:[%s4691_s11 + $0x8] sm:$0xff] }
 0x750   : > { %v1388_v41 = vmul.f32 1.442695, %v1387_v40  ;;  %v1815_v40 = vld [vmem:[%s4691_s11] sm:$0xff] }
 0x752   : > { %3909 = vpow2.f32 %v1388_v41 }
 0x757   : > { %v3908_v42 = vpop.eup %3907 }
 0x758   : > { %v1082_v43 = vmul.f32 %v3908_v42, %v3906_v34 }
 0x75a   : > { %3694 = vmatmul.mubr.msk.f32.vlgmr.msra.gmra.mxu1 %vm917_vm6, %v1082_v43 }
 0x75b   : > { %3698 = vmatprep.mubr.msk.f32.mxu1 %vm3958_vm1, %v3957_v47  ;;  %3697 = vmatpush3.msra.mxu1 %v822_v46 }
 0x75c   : > { %3701 = vmatprep.subr.mxu1 %v3957_v47 }
 0x75f   : > { %v3910_v44 = vpop.eup %3909 }
 0x760   : > { %v1390_v45 = vsel %vm903_vm5, %v3910_v44, 0.0 }
 0x761   : > { %1391 = vadd.xlane.f32.xlu1 %v1390_v45  ;;  %v4386_v45 = vld [vmem:[%s4690_s10] sm:$0x3] }
 0x772   : > { %1548 = vrot.lane.b32.xlu1 %v4247_v4, %s4703_s0  ;;  %s4718_s0 = smov 104  }
 0x7ea   : > { %v1392_v48 = vpop.xlane.xlu1 %1391 }
 0x7eb   : > { %3911 = vrcp.f32 %v1392_v48 }
 0x7ee   : > { %v1549_v59 = vpop.permute.xlu1 %1548 }
 0x7f8   : > { %v3912_v52 = vpop.eup %3911 }
 0x7f9   : > { %v1394_v54 = vmul.f32 %v3912_v52, %v3910_v44  ;;  %v4381_v44 = vld [vmem:[%s4689_s9] sm:$0x3] }
 0x7fa   : > { %v1808_v46 = vrot.slane %v4381_v44, %v4221_v56 }
 0x81a   : > { %v1156_v50 = vpop.f32.mrf.mxu1 }
 0x81b   : > { %3699 = vmatmul.mubr.msk.f32.vlgmr.msra.gmra.mxu1 %vm828_vm3, %v1156_v50  ;;  %v1813_v50 = vrot.slane %v4386_v45, %v4221_v56 }
 0x81c   : > { %v3695_v51 = vpop.f32.mrf.mxu1  ;;  %3702 = vmatpush3.msra.mxu1 %v821_v49  ;;  %3703 = vmatprep.mubr.msk.f32.mxu1 %vm3958_vm1, %v3957_v47 }
 0x81d   : > { %3711 = vmatprep.subr.mxu1 %v3957_v47 }
 0x81f   : > { %3704 = vmatmul.mubr.msk.f32.vlgmr.msra.gmra.mxu1 %vm828_vm3, %v990_v25 }
 0x820   : > { %3712 = vmatpush3.msk.msra.mxu1 %vm921_vm4, %v1396_v53  ;;  %3713 = vmatprep.mubr.msk.f32.mxu1 %vm3958_vm1, %v3957_v47  ;;  %v1930_v53 = vld [vmem:[%s4693_s13 + $0x38] sm:$0xff] }
 0x821   : > { %3721 = vmatprep.subr.mxu1 %v3957_v47 }
 0x823   : > { %3714 = vmatmul.mubr.msk.f32.vlgmr.msra.gmra.mxu1 %vm917_vm6, %v1394_v54  ;;  %v1929_v54 = vld [vmem:[%s4693_s13 + $0x30] sm:$0xff] }
 0x824   : > { %3722 = vmatpush3.xpose.msk.msra.mxu1 %vm828_vm3, %v1549_v59  ;;  %3723 = vmatprep.mubr.msk.f32.mxu1 %vm3958_vm1, %v3957_v47  ;;  %v1928_v59 = vld [vmem:[%s4693_s13 + $0x28] sm:$0xff] }
 0x825   : > { %3731 = vmatprep.subr.mxu1 %v3957_v47 }
 0x827   : > { %3724 = vmatmul.mubr.msk.f32.vlgmr.msra.gmra.mxu1 %vm828_vm3, %v1547_v60  ;;  %v1927_v60 = vld [vmem:[%s4693_s13 + $0x20] sm:$0xff] }
 0x828   : > { %3733 = vmatprep.mubr.msk.f32.mxu1 %vm3958_vm1, %v3957_v47  ;;  %3732 = vmatpush3.msra.mxu1 %v824_v16 }
 0x829   : > { %3747 = vmatprep.subr.mxu1 %v3957_v47 }
 0x8db   : > { %v1229_v62 = vpop.f32.mrf.mxu1 }
 0x8dd   : > { %v3700_v63 = vpop.f32.mrf.mxu1 }
 0x8de   : > { %v1924_v63 = vld [vmem:[%s4693_s13 + $0x8] sm:$0xff] }
 0x8df   : > { %v1302_v0 = vpop.f32.mrf.mxu1 }
 0x8e0   : > { %v1303_v2 = vadd.f32 %v1302_v0, %v1229_v62  ;;  %v1925_v62 = vld [vmem:[%s4693_s13 + $0x10] sm:$0xff]  ;;  %v1923_v0 = vld [vmem:[%s4693_s13] sm:$0xff] }
 0x8e1   : > { %v3705_v3 = vpop.f32.mrf.mxu1 }
 0x8e3   : > { %v1468_v5 = vpop.f32.mrf.mxu1 }
 0x8e4   : > { %3719 = vmatmul.mubr.msk.f32.vlgmr.msra.gmra.mxu0 %vm828_vm3, %v1468_v5 }
 0x8e5   : > { %v3715_v6 = vpop.f32.mrf.mxu1  ;;  %3728 = vmatprep.mubr.msk.f32.mxu0 %vm3958_vm1, %v3957_v47 }
 0x8e7   : > { %v1620_v7 = vpop.f32.mrf.mxu1 }
 0x8e8   : > { %v1624_v8 = vsel %vm903_vm5, %v1620_v7, -inf }
 0x8e9   : > { %1625 = vmax.xlane.f32.xlu0 %v1624_v8  ;;  %v3725_v9 = vpop.f32.mrf.mxu1 }
 0x8ff   : > { %1635 = vrot.lane.b32.xlu0 %v4247_v4, %s4702_s28 }
 0x972   : > { %v1626_v10 = vpop.xlane.xlu0 %1625 }
 0x973   : > { %v1627_v11 = vsub.f32 %v1620_v7, %v1626_v10 }
 0x975   : > { %v1628_v12 = vmul.f32 1.442695, %v1627_v11 }
 0x976   : > { %v1636_v13 = vpop.permute.xlu0 %1635 }
 0x977   : > { %3913 = vpow2.f32 %v1628_v12  ;;  %3727 = vmatpush3.msk.msra.mxu0 %vm921_vm4, %v1636_v13 }
 0x978   : > { %3736 = vmatprep.subr.mxu0 %v3957_v47 }
 0x984   : > { %v3914_v14 = vpop.eup %3913 }
 0x985   : > { %v1630_v15 = vsel %vm903_vm5, %v3914_v14, 0.0 }
 0x986   : > { %1631 = vadd.xlane.f32.xlu1 %v1630_v15 }
 0x9a4   : > { %v1541_v4 = vpop.f32.mrf.mxu0 }
 0x9a5   : > { %v1545_v17 = vadd.f32 %v1541_v4, %v1303_v2  ;;  %v4430_v2 = vld [vmem:[%s4692_s12] sm:$0x3] }
 0x9a6   : > { %v3720_v18 = vpop.f32.mrf.mxu0  ;;  %v1822_v3 = vrot.slane %v4430_v2, %v4221_v56 }
 0xa0f   : > { %v1632_v19 = vpop.xlane.xlu1 %1631 }
 0xa10   : > { %3915 = vrcp.f32 %v1632_v19 }
 0xa1d   : > { %v3916_v20 = vpop.eup %3915 }
 0xa1e   : > { %v1634_v21 = vmul.f32 %v3916_v20, %v3914_v14 }
 0xa20   : > { %3729 = vmatmul.mubr.msk.f32.vlgmr.msra.gmra.mxu0 %vm917_vm6, %v1634_v21 }
 0xa21   : > { %3744 = vmatprep.mubr.msk.f32.mxu0 %vm3958_vm1, %v3957_v47  ;;  %3737 = vmatpush3.msra.mxu0 %v1818_v37 }
 0xa22   : > { %3738 = vmatprep.subr.mxu0 %v3957_v47 }
 0xae0   : > { %v1708_v22 = vpop.f32.mrf.mxu0 }
 0xae1   : > { %3734 = vmatmul.mubr.msk.f32.vlgmr.msra.gmra.mxu1 %vm828_vm3, %v1708_v22 }
 0xae2   : > { %v3730_v23 = vpop.f32.mrf.mxu0  ;;  %3763 = vmatprep.mubr.msk.f32.mxu1 %vm3958_vm1, %v3957_v47  ;;  %3748 = vmatpush3.msra.mxu1 %v1930_v53 }
 0xae3   : > { %3749 = vmatprep.subr.mxu1 %v3957_v47 }
 0xae4   : > { %3750 = vmatpush3.msra.mxu1 %v1929_v54  ;;  %v4468_v54 = vsub.s32 1, %v4218_v55 }
 0xae5   : > { %3751 = vmatprep.subr.mxu1 %v3957_v47 }
 0xae6   : > { %3752 = vmatpush3.msra.mxu1 %v1928_v59  ;;  %v2027_v59 = vrot.slane %v4226_v57, %v4468_v54 }
 0xae7   : > { %3753 = vmatprep.subr.mxu1 %v3957_v47 }
 0xae8   : > { %3754 = vmatpush3.msra.mxu1 %v1927_v60 }
 0xae9   : > { %3755 = vmatprep.subr.mxu1 %v3957_v47 }
 0xaea   : > { %3756 = vmatpush3.msra.mxu1 %v1926_v61  ;;  %v2032_v61 = vrot.slane %v4231_v58, %v4468_v54 }
 0xaeb   : > { %3757 = vmatprep.subr.mxu1 %v3957_v47 }
 0xaec   : > { %3758 = vmatpush3.msra.mxu1 %v1925_v62 }
 0xaed   : > { %3759 = vmatprep.subr.mxu1 %v3957_v47 }
 0xaee   : > { %3760 = vmatpush3.msra.mxu1 %v1924_v63 }
 0xaef   : > { %3761 = vmatprep.subr.mxu1 %v3957_v47 }
 0xaf0   : > { %3762 = vmatpush3.msra.mxu1 %v1923_v0 }
 0xaf1   : > { %3782 = vmatprep.subr.mxu1 %v3957_v47 }
 0xba1   : > { %v1781_v25 = vpop.f32.mrf.mxu1 }
 0xba2   : > { %v1785_v26 = vadd.f32 %v1781_v25, %v1545_v17 }
 0xba3   : > { %v3735_v28 = vpop.f32.mrf.mxu1 }
 0xba4   : > { %v1786_v29 = vadd.f32 %v1785_v26, %v4190_v39  ;;  %v1817_v39 = vld [vmem:[%s4691_s11 + $0x10] sm:$0xff] }
 0xba5   : > { %3739 = vmatpush3.msra.mxu0 %v1817_v39 }
 0xba6   : > { %v4356_v30 = vadd.f32 %v1790_v27, %v1786_v29  ;;  %3740 = vmatprep.subr.mxu0 %v3957_v47 }
 0xba7   : > { %3741 = vmatpush3.msra.mxu0 %v1816_v38 }
 0xba8   : > { %v1792_v31 = vsel %vm714_vm0, %v4356_v30, 0.0  ;;  %3742 = vmatprep.subr.mxu0 %v3957_v47 }
 0xba9   : > { %1793 = vadd.xlane.f32.xlu1 %v1792_v31  ;;  %3743 = vmatpush3.msra.mxu0 %v1815_v40 }
 0xbaa   : > { %3766 = vmatprep.subr.mxu0 %v3957_v47 }
 0xc32   : > { %v1794_v32 = vpop.xlane.xlu1 %1793 }
 0xc33   : > { %v1795_v33 = vmul.f32 0.03125, %v1794_v32 }
 0xc35   : > { %v1796_v34 = vsub.f32 %v4356_v30, %v1795_v33 }
 0xc37   : > { %v1797_v35 = vmul.f32 %v1796_v34, %v1796_v34 }
 0xc39   : > { %v1798_v36 = vsel %vm714_vm0, %v1797_v35, 0.0 }
 0xc3a   : > { %1799 = vadd.xlane.f32.xlu1 %v1798_v36 }
 0xcc3   : > { %v1800_v41 = vpop.xlane.xlu1 %1799 }
 0xcc4   : > { %v1801_v42 = vmul.f32 0.03125, %v1800_v41 }
 0xcc6   : > { %v1802_v43 = vadd.f32 1e-12, %v1801_v42 }
 0xcc8   : > { %3917 = vrsqrt.f32 %v1802_v43 }
 0xcd5   : > { %v3918_v48 = vpop.eup %3917 }
 0xcd6   : > { %v1804_v49 = vmul.f32 %v3918_v48, %v1796_v34  ;;  %v4440_v34 = vld [vmem:[%s4694_s14] sm:$0x3] }
 0xcd7   : > { %v2009_v35 = vrot.slane %v4440_v34, %v4221_v56  ;;  %v3493_v56 = vld [vmem:[%s4685_s5 + $0x38] sm:$0xff] }
 0xcd8   : > { %v1809_v51 = vmul.f32 %v1808_v46, %v1804_v49  ;;  %v3491_v49 = vld [vmem:[%s4685_s5 + $0x28] sm:$0xff] }
 0xcda   : > { %v1814_v52 = vadd.f32 %v1813_v50, %v1809_v51  ;;  %v3490_v50 = vld [vmem:[%s4685_s5 + $0x20] sm:$0xff] }
 0xcdc   : > { %3745 = vmatmul.mubr.msk.f32.vlgmr.msra.gmra.mxu0 %vm747_vm2, %v1814_v52 }
 0xcdd   : > { %3774 = vmatprep.mubr.msk.f32.mxu0 %vm3958_vm1, %v3957_v47  ;;  %3767 = vmatpush3.msra.mxu0 %v3493_v56 }
 0xcde   : > { %3768 = vmatprep.subr.mxu0 %v3957_v47 }
 0xd9c   : > { %v1892_v5 = vpop.f32.mrf.mxu0 }
 0xd9d   : > { %v1893_v6 = vadd.f32 %v1892_v5, %v1822_v3  ;;  %v2042_v3 = vrot.slane %v4243_v1, %v4468_v54 }
 0xd9e   : > { %v3746_v7 = vpop.f32.mrf.mxu0 }
 0xd9f   : > { %v1897_v8 = vmul.f32 0.70710677, %v1893_v6  ;;  %v1896_v31 = vmul.f32 0.5, %v1893_v6 }
 0xda1   : > { %v1898_v9 = vand.u32 2147483647, %v1897_v8  ;;  %vm1918_vm7 = vcmp.ge.f32.partialorder %v1897_v8, 0.0 }
 0xda3   : > { %v1899_v10 = vmul.f32 0.3275911, %v1898_v9  ;;  %v1912_v12 = vsub.f32 0.0, %v1898_v9 }
 0xda5   : > { %v1900_v11 = vadd.f32 1.0, %v1899_v10  ;;  %v1913_v13 = vmul.f32 %v1912_v12, %v1898_v9 }
 0xda7   : > { %3919 = vrcp.f32 %v1900_v11  ;;  %v1914_v16 = vmul.f32 1.442695, %v1913_v13 }
 0xda9   : > { %3921 = vpow2.f32 %v1914_v16 }
 0xdb4   : > { %v3920_v14 = vpop.eup %3919 }
 0xdb5   : > { %v1903_v15 = vmul.f32 1.0614054, %v3920_v14 }
 0xdb6   : > { %v3922_v25 = vpop.eup %3921 }
 0xdb7   : > { %v1904_v4 = vadd.f32 -1.4531521, %v1903_v15 }
 0xdb9   : > { %v1905_v17 = vmul.f32 %v3920_v14, %v1904_v4 }
 0xdbb   : > { %v1906_v18 = vadd.f32 1.4214138, %v1905_v17 }
 0xdbd   : > { %v1907_v19 = vmul.f32 %v3920_v14, %v1906_v18 }
 0xdbf   : > { %v1908_v20 = vadd.f32 -0.28449672, %v1907_v19 }
 0xdc1   : > { %v1909_v21 = vmul.f32 %v3920_v14, %v1908_v20 }
 0xdc3   : > { %v1910_v22 = vadd.f32 0.2548296, %v1909_v21 }
 0xdc5   : > { %v1911_v23 = vmul.f32 %v3920_v14, %v1910_v22 }
 0xdc7   : > { %v1916_v26 = vmul.f32 %v3922_v25, %v1911_v23 }
 0xdc9   : > { %v1917_v27 = vsub.f32 1.0, %v1916_v26 }
 0xdcb   : > { %v1919_v28 = vsub.f32 0.0, %v1917_v27 }
 0xdcd   : > { %v1920_v29 = vsel %vm1918_vm7, %v1917_v27, %v1919_v28 }
 0xdce   : > { %v1921_v32 = vadd.f32 1.0, %v1920_v29 }
 0xdd0   : > { %v1922_v33 = vmul.f32 %v1921_v32, %v1896_v31  ;;  %v3495_v32 = vld [vmem:[%s4687_s7 + $0x20] sm:$0xff] }
 0xdd2   : > { %3764 = vmatmul.mubr.msk.f32.vlgmr.msra.gmra.mxu1 %vm1931_vm8, %v1922_v33  ;;  %v3496_v33 = vld [vmem:[%s4687_s7 + $0x28] sm:$0xff] }
 0xdd3   : > { %3784 = vmatprep.mubr.msk.f32.mxu1 %vm3958_vm1, %v3957_v47 }
 0xe92   : > { %v2001_v36 = vpop.f32.mrf.mxu1 }
 0xe93   : > { %v2005_v37 = vadd.f32 %v2001_v36, %v4356_v30  ;;  %v3492_v30 = vld [vmem:[%s4685_s5 + $0x30] sm:$0xff] }
 0xe94   : > { %v3765_v39 = vpop.f32.mrf.mxu1  ;;  %3769 = vmatpush3.msra.mxu0 %v3492_v30 }
 0xe95   : > { %v4445_v38 = vadd.f32 %v2009_v35, %v2005_v37  ;;  %3770 = vmatprep.subr.mxu0 %v3957_v47 }
 0xe96   : > { %3771 = vmatpush3.msra.mxu0 %v3491_v49 }
 0xe97   : > { %v2011_v40 = vsel %vm714_vm0, %v4445_v38, 0.0  ;;  %3772 = vmatprep.subr.mxu0 %v3957_v47 }
 0xe98   : > { %2012 = vadd.xlane.f32.xlu0 %v2011_v40  ;;  %3773 = vmatpush3.msra.mxu0 %v3490_v50 }
 0xe99   : > { %3777 = vmatprep.subr.mxu0 %v3957_v47 }
 0xf21   : > { %v2013_v41 = vpop.xlane.xlu0 %2012 }
 0xf22   : > { %v2014_v42 = vmul.f32 0.03125, %v2013_v41 }
 0xf24   : > { %v2015_v43 = vsub.f32 %v4445_v38, %v2014_v42 }
 0xf26   : > { %v2016_v46 = vmul.f32 %v2015_v43, %v2015_v43 }
 0xf28   : > { %v2017_v48 = vsel %vm714_vm0, %v2016_v46, 0.0 }
 0xf29   : > { %2018 = vadd.xlane.f32.xlu1 %v2017_v48 }
 0xfb2   : > { %v2019_v51 = vpop.xlane.xlu1 %2018 }
 0xfb3   : > { %v2020_v52 = vmul.f32 0.03125, %v2019_v51 }
 0xfb5   : > { %v2021_v53 = vadd.f32 1e-12, %v2020_v52 }
 0xfb7   : > { %3923 = vrsqrt.f32 %v2021_v53 }
 0xfc4   : > { %v3924_v60 = vpop.eup %3923 }
 0xfc5   : > { %v2023_v62 = vmul.f32 %v3924_v60, %v2015_v43 }
 0xfc7   : > { %v2028_v63 = vmul.f32 %v2027_v59, %v2023_v62 }
 0xfc9   : > { %v2033_v0 = vadd.f32 %v2032_v61, %v2028_v63 }
 0xfcb   : > { %3775 = vmatmul.mubr.msk.f32.vlgmr.msra.gmra.mxu0 %vm747_vm2, %v2033_v0 }
 0xfcc   : > { %3779 = vmatprep.mubr.msk.f32.mxu0 %vm3958_vm1, %v3957_v47 }
0x108b   : > { %v2112_v55 = vpop.f32.mrf.mxu0 }
0x108c   : > { %v4479_v5 = vadd.f32 %v2112_v55, %v2042_v3 }
0x108d   : > { %v3776_v6 = vpop.f32.mrf.mxu0 }
0x108e   : > { %2122 = vrot.lane.b32.xlu1 %v4479_v5, %s3960_s1  ;;  %s4716_s1 = smov 112   ;;  %v3497_v6 = vld [vmem:[%s4687_s7 + $0x30] sm:$0xff] }
0x1092   : > { %2288 = vrot.lane.b32.xlu1 %v4479_v5, %s3962_s23 }
0x1096   : > { %2286 = vrot.lane.b32.xlu1 %v4479_v5, %s3963_s24 }
0x1100   : > { %v2123_v57 = vpop.permute.xlu1 %2122 }
0x1101   : > { %3778 = vmatpush3.xpose.msk.msra.mxu0 %vm828_vm3, %v2123_v57 }
0x1102   : > { %3787 = vmatprep.subr.mxu0 %v3957_v47 }
0x1104   : > { %3780 = vmatmul.mubr.msk.f32.vlgmr.msra.gmra.mxu0 %vm828_vm3, %v4479_v5  ;;  %v2289_v58 = vpop.permute.xlu1 %2288 }
0x1105   : > { %3788 = vmatpush3.xpose.msk.msra.mxu0 %vm828_vm3, %v2289_v58  ;;  %3789 = vmatprep.mubr.msk.f32.mxu0 %vm3958_vm1, %v3957_v47 }
0x1106   : > { %3797 = vmatprep.subr.mxu0 %v3957_v47 }
0x1108   : > { %v2287_v1 = vpop.permute.xlu1 %2286 }
0x1109   : > { %3790 = vmatmul.mubr.msk.f32.vlgmr.msra.gmra.mxu0 %vm828_vm3, %v2287_v1 }
0x110a   : > { %3799 = vmatprep.mubr.msk.f32.mxu0 %vm3958_vm1, %v3957_v47  ;;  %3798 = vmatpush3.msra.mxu0 %v3496_v33 }
0x110b   : > { %3807 = vmatprep.subr.mxu0 %v3957_v47 }
0x11c4   : > { %v2194_v7 = vpop.f32.mrf.mxu0 }
0x11c5   : > { %v2198_v8 = vsel %vm903_vm5, %v2194_v7, -inf }
0x11c6   : > { %2199 = vmax.xlane.f32.xlu0 %v2198_v8  ;;  %v3781_v9 = vpop.f32.mrf.mxu0 }
0x11c9   : > { %v2360_v10 = vpop.f32.mrf.mxu0 }
0x11ca   : > { %v2364_v11 = vsel %vm903_vm5, %v2360_v10, -inf }
0x11cb   : > { %2365 = vmax.xlane.f32.xlu1 %v2364_v11  ;;  %v3791_v12 = vpop.f32.mrf.mxu0 }
0x11dc   : > { %2209 = vrot.lane.b32.xlu0 %v4479_v5, %s3959_s30  ;;  %2600 = vrot.lane.b32.xlu1 %v4479_v5, %s3961_s18  ;;  %s4715_s30 = smov 56  }
0x124f   : > { %v2200_v13 = vpop.xlane.xlu0 %2199 }
0x1250   : > { %v2201_v14 = vsub.f32 %v2194_v7, %v2200_v13 }
0x1252   : > { %v2202_v15 = vmul.f32 1.442695, %v2201_v14 }
0x1253   : > { %v2210_v16 = vpop.permute.xlu0 %2209 }
0x1254   : > { %3925 = vpow2.f32 %v2202_v15  ;;  %3783 = vmatpush3.msk.msra.mxu1 %vm921_vm4, %v2210_v16  ;;  %v2366_v4 = vpop.xlane.xlu1 %2365  ;;  %v3498_v15 = vld [vmem:[%s4687_s7 + $0x38] sm:$0xff] }
0x1255   : > { %v2367_v17 = vsub.f32 %v2360_v10, %v2366_v4  ;;  %3792 = vmatprep.subr.mxu1 %v3957_v47 }
0x1257   : > { %v2368_v18 = vmul.f32 1.442695, %v2367_v17 }
0x1258   : > { %v2601_v39 = vpop.permute.xlu1 %2600 }
0x1259   : > { %3927 = vpow2.f32 %v2368_v18 }
0x1261   : > { %v3926_v19 = vpop.eup %3925 }
0x1262   : > { %v2204_v20 = vsel %vm903_vm5, %v3926_v19, 0.0 }
0x1263   : > { %2205 = vadd.xlane.f32.xlu0 %v2204_v20 }
0x1266   : > { %v3928_v21 = vpop.eup %3927 }
0x1267   : > { %v2370_v22 = vsel %vm903_vm5, %v3928_v21, 0.0 }
0x1268   : > { %2371 = vadd.xlane.f32.xlu0 %v2370_v22 }
0x127e   : > { %2375 = vrot.lane.b32.xlu0 %v4479_v5, %s4715_s30  ;;  %s600_s30 = scalar_lea.vmem %s4699_s19, %s4722_s21 }
0x1282   : > { %2598 = vrot.lane.b32.xlu0 %v4479_v5, %s4716_s1 }
0x12ec   : > { %v2206_v23 = vpop.xlane.xlu0 %2205 }
0x12ed   : > { %3929 = vrcp.f32 %v2206_v23 }
0x12f1   : > { %v2372_v25 = vpop.xlane.xlu0 %2371 }
0x12f2   : > { %3931 = vrcp.f32 %v2372_v25  ;;  %v3082_v25 = vrot.slane %v4351_v24, %v4468_v54  ;;  %v3522_v24 = vld [vmem:[%s4691_s11 + $0x38] sm:$0xff] }
0x12f5   : > { %v2376_v28 = vpop.permute.xlu0 %2375 }
0x12f9   : > { %v2599_v41 = vpop.permute.xlu0 %2598 }
0x12fa   : > { %v3930_v26 = vpop.eup %3929 }
0x12fb   : > { %v2208_v27 = vmul.f32 %v3930_v26, %v3926_v19 }
0x12fd   : > { %3785 = vmatmul.mubr.msk.f32.vlgmr.msra.gmra.mxu1 %vm917_vm6, %v2208_v27 }
0x12fe   : > { %3793 = vmatpush3.msk.msra.mxu1 %vm921_vm4, %v2376_v28  ;;  %3794 = vmatprep.mubr.msk.f32.mxu1 %vm3958_vm1, %v3957_v47 }
0x12ff   : > { %v3932_v29 = vpop.eup %3931  ;;  %3802 = vmatprep.subr.mxu1 %v3957_v47 }
0x1300   : > { %v2374_v31 = vmul.f32 %v3932_v29, %v3928_v21 }
0x1302   : > { %3795 = vmatmul.mubr.msk.f32.vlgmr.msra.gmra.mxu1 %vm917_vm6, %v2374_v31 }
0x1303   : > { %3804 = vmatprep.mubr.msk.f32.mxu1 %vm3958_vm1, %v3957_v47  ;;  %3803 = vmatpush3.msra.mxu1 %v3495_v32 }
0x1304   : > { %3812 = vmatprep.subr.mxu1 %v3957_v47 }
0x13bd   : > { %v2282_v35 = vpop.f32.mrf.mxu1 }
0x13be   : > { %3805 = vmatmul.mubr.msk.f32.vlgmr.msra.gmra.mxu1 %vm828_vm3, %v2282_v35 }
0x13bf   : > { %v3786_v36 = vpop.f32.mrf.mxu1  ;;  %3814 = vmatprep.mubr.msk.f32.mxu1 %vm3958_vm1, %v3957_v47 }
0x13c2   : > { %v2448_v37 = vpop.f32.mrf.mxu1 }
0x13c3   : > { %3800 = vmatmul.mubr.msk.f32.vlgmr.msra.gmra.mxu0 %vm828_vm3, %v2448_v37  ;;  %v3520_v37 = vld [vmem:[%s4691_s11 + $0x28] sm:$0xff] }
0x13c4   : > { %3808 = vmatpush3.xpose.msk.msra.mxu0 %vm828_vm3, %v2601_v39  ;;  %v3796_v40 = vpop.f32.mrf.mxu1  ;;  %3809 = vmatprep.mubr.msk.f32.mxu0 %vm3958_vm1, %v3957_v47  ;;  %v3519_v39 = vld [vmem:[%s4691_s11 + $0x20] sm:$0xff] }
0x13c5   : > { %3817 = vmatprep.subr.mxu0 %v3957_v47 }
0x13c7   : > { %3810 = vmatmul.mubr.msk.f32.vlgmr.msra.gmra.mxu0 %vm828_vm3, %v2599_v41 }
0x13c8   : > { %3819 = vmatprep.mubr.msk.f32.mxu0 %vm3958_vm1, %v3957_v47  ;;  %3818 = vmatpush3.msra.mxu0 %v3497_v6 }
0x13c9   : > { %3827 = vmatprep.subr.mxu0 %v3957_v47 }
0x147e   : > { %v2594_v42 = vpop.f32.mrf.mxu1 }
0x1480   : > { %v3806_v43 = vpop.f32.mrf.mxu1 }
0x1481   : > { %v3100_v43 = vrot.slane %v4381_v44, %v4468_v54  ;;  %v3530_v44 = vld [vmem:[%s4693_s13 + $0x70] sm:$0xff] }
0x1483   : > { %v2521_v46 = vpop.f32.mrf.mxu0 }
0x1484   : > { %v2595_v48 = vadd.f32 %v2594_v42, %v2521_v46 }
0x1485   : > { %v3801_v56 = vpop.f32.mrf.mxu0 }
0x1486   : > { %v3105_v56 = vrot.slane %v4386_v45, %v4468_v54  ;;  %v3529_v45 = vld [vmem:[%s4693_s13 + $0x68] sm:$0xff] }
0x1487   : > { %v2672_v30 = vpop.f32.mrf.mxu0 }
0x1488   : > { %v2676_v49 = vsel %vm903_vm5, %v2672_v30, -inf }
0x1489   : > { %2677 = vmax.xlane.f32.xlu0 %v2676_v49  ;;  %v3811_v50 = vpop.f32.mrf.mxu0 }
0x148a   : > { %v3531_v50 = vld [vmem:[%s4693_s13 + $0x78] sm:$0xff] }
0x149f   : > { %2687 = vrot.lane.b32.xlu0 %v4479_v5, %s4717_s3 }
0x14a3   : > { %2838 = vrot.lane.b32.xlu0 %v4479_v5, %s4718_s0 }
0x1512   : > { %v2678_v51 = vpop.xlane.xlu0 %2677 }
0x1513   : > { %v2679_v52 = vsub.f32 %v2672_v30, %v2678_v51  ;;  %v3528_v51 = vld [vmem:[%s4693_s13 + $0x60] sm:$0xff] }
0x1515   : > { %v2680_v53 = vmul.f32 1.442695, %v2679_v52  ;;  %v3527_v52 = vld [vmem:[%s4693_s13 + $0x58] sm:$0xff] }
0x1516   : > { %v2688_v59 = vpop.permute.xlu0 %2687 }
0x1517   : > { %3933 = vpow2.f32 %v2680_v53  ;;  %3813 = vmatpush3.msk.msra.mxu1 %vm921_vm4, %v2688_v59  ;;  %v3526_v53 = vld [vmem:[%s4693_s13 + $0x50] sm:$0xff]  ;;  %v3525_v59 = vld [vmem:[%s4693_s13 + $0x48] sm:$0xff] }
0x1518   : > { %3822 = vmatprep.subr.mxu1 %v3957_v47 }
0x151a   : > { %v2839_v55 = vpop.permute.xlu0 %2838 }
0x1524   : > { %v3934_v60 = vpop.eup %3933 }
0x1525   : > { %v2682_v61 = vsel %vm903_vm5, %v3934_v60, 0.0 }
0x1526   : > { %2683 = vadd.xlane.f32.xlu1 %v2682_v61  ;;  %v3115_v61 = vrot.slane %v4430_v2, %v4468_v54 }
0x1537   : > { %2840 = vrot.lane.b32.xlu1 %v4479_v5, %s4719_s26 }
0x15af   : > { %v2684_v62 = vpop.xlane.xlu1 %2683 }
0x15b0   : > { %3935 = vrcp.f32 %v2684_v62 }
0x15b3   : > { %v2841_v3 = vpop.permute.xlu1 %2840 }
0x15bd   : > { %v3936_v63 = vpop.eup %3935 }
0x15be   : > { %v2686_v0 = vmul.f32 %v3936_v63, %v3934_v60  ;;  %v3524_v60 = vld [vmem:[%s4693_s13 + $0x40] sm:$0xff] }
0x15c0   : > { %3815 = vmatmul.mubr.msk.f32.vlgmr.msra.gmra.mxu1 %vm917_vm6, %v2686_v0 }
0x15c1   : > { %3823 = vmatpush3.xpose.msk.msra.mxu1 %vm828_vm3, %v2841_v3  ;;  %3824 = vmatprep.mubr.msk.f32.mxu1 %vm3958_vm1, %v3957_v47 }
0x15c2   : > { %3832 = vmatprep.subr.mxu1 %v3957_v47 }
0x15c4   : > { %3825 = vmatmul.mubr.msk.f32.vlgmr.msra.gmra.mxu1 %vm828_vm3, %v2839_v55 }
0x15c5   : > { %3834 = vmatprep.mubr.msk.f32.mxu1 %vm3958_vm1, %v3957_v47  ;;  %3833 = vmatpush3.msra.mxu1 %v3498_v15 }
0x15c6   : > { %3848 = vmatprep.subr.mxu1 %v3957_v47 }
0x1680   : > { %v2760_v57 = vpop.f32.mrf.mxu1 }
0x1681   : > { %3820 = vmatmul.mubr.msk.f32.vlgmr.msra.gmra.mxu0 %vm828_vm3, %v2760_v57 }
0x1682   : > { %v3816_v58 = vpop.f32.mrf.mxu1  ;;  %3829 = vmatprep.mubr.msk.f32.mxu0 %vm3958_vm1, %v3957_v47 }
0x1684   : > { %v2912_v1 = vpop.f32.mrf.mxu1 }
0x1685   : > { %v2916_v7 = vsel %vm903_vm5, %v2912_v1, -inf }
0x1686   : > { %2917 = vmax.xlane.f32.xlu0 %v2916_v7  ;;  %v3826_v8 = vpop.f32.mrf.mxu1 }
0x169c   : > { %2927 = vrot.lane.b32.xlu0 %v4479_v5, %s4720_s27 }
0x170f   : > { %v2918_v9 = vpop.xlane.xlu0 %2917 }
0x1710   : > { %v2919_v10 = vsub.f32 %v2912_v1, %v2918_v9 }
0x1712   : > { %v2920_v11 = vmul.f32 1.442695, %v2919_v10 }
0x1713   : > { %v2928_v12 = vpop.permute.xlu0 %2927 }
0x1714   : > { %3937 = vpow2.f32 %v2920_v11  ;;  %3828 = vmatpush3.msk.msra.mxu0 %vm921_vm4, %v2928_v12 }
0x1715   : > { %3837 = vmatprep.subr.mxu0 %v3957_v47 }
0x1721   : > { %v3938_v13 = vpop.eup %3937 }
0x1722   : > { %v2922_v14 = vsel %vm903_vm5, %v3938_v13, 0.0 }
0x1723   : > { %2923 = vadd.xlane.f32.xlu1 %v2922_v14 }
0x1741   : > { %v2833_v5 = vpop.f32.mrf.mxu0 }
0x1742   : > { %v2837_v16 = vadd.f32 %v2833_v5, %v2595_v48 }
0x1743   : > { %v3821_v4 = vpop.f32.mrf.mxu0 }
0x17ac   : > { %v2924_v17 = vpop.xlane.xlu1 %2923 }
0x17ad   : > { %3939 = vrcp.f32 %v2924_v17 }
0x17ba   : > { %v3940_v18 = vpop.eup %3939 }
0x17bb   : > { %v2926_v19 = vmul.f32 %v3940_v18, %v3938_v13 }
0x17bd   : > { %3830 = vmatmul.mubr.msk.f32.vlgmr.msra.gmra.mxu0 %vm917_vm6, %v2926_v19 }
0x17be   : > { %3845 = vmatprep.mubr.msk.f32.mxu0 %vm3958_vm1, %v3957_v47  ;;  %3838 = vmatpush3.msra.mxu0 %v3522_v24 }
0x17bf   : > { %3839 = vmatprep.subr.mxu0 %v3957_v47 }
0x187d   : > { %v3000_v20 = vpop.f32.mrf.mxu0 }
0x187e   : > { %3835 = vmatmul.mubr.msk.f32.vlgmr.msra.gmra.mxu1 %vm828_vm3, %v3000_v20 }
0x187f   : > { %v3831_v21 = vpop.f32.mrf.mxu0  ;;  %3864 = vmatprep.mubr.msk.f32.mxu1 %vm3958_vm1, %v3957_v47  ;;  %3849 = vmatpush3.msra.mxu1 %v3531_v50 }
0x1880   : > { %3850 = vmatprep.subr.mxu1 %v3957_v47 }
0x1881   : > { %3851 = vmatpush3.msra.mxu1 %v3530_v44 }
0x1882   : > { %3852 = vmatprep.subr.mxu1 %v3957_v47 }
0x1883   : > { %3853 = vmatpush3.msra.mxu1 %v3529_v45 }
0x1884   : > { %3854 = vmatprep.subr.mxu1 %v3957_v47 }
0x1885   : > { %3855 = vmatpush3.msra.mxu1 %v3528_v51 }
0x1886   : > { %3856 = vmatprep.subr.mxu1 %v3957_v47 }
0x1887   : > { %3857 = vmatpush3.msra.mxu1 %v3527_v52 }
0x1888   : > { %3858 = vmatprep.subr.mxu1 %v3957_v47 }
0x1889   : > { %3859 = vmatpush3.msra.mxu1 %v3526_v53 }
0x188a   : > { %3860 = vmatprep.subr.mxu1 %v3957_v47 }
0x188b   : > { %3861 = vmatpush3.msra.mxu1 %v3525_v59 }
0x188c   : > { %3862 = vmatprep.subr.mxu1 %v3957_v47 }
0x188d   : > { %3863 = vmatpush3.msra.mxu1 %v3524_v60 }
0x193e   : > { %v3073_v22 = vpop.f32.mrf.mxu1 }
0x193f   : > { %v3077_v23 = vadd.f32 %v3073_v22, %v2837_v16 }
0x1940   : > { %v3836_v26 = vpop.f32.mrf.mxu1 }
0x1941   : > { %v3078_v27 = vadd.f32 %v3077_v23, %v4445_v38  ;;  %v3521_v38 = vld [vmem:[%s4691_s11 + $0x30] sm:$0xff]  ;;  %v3302_v23 = vrot.slane %v4440_v34, %v4468_v54  ;;  %v3334_v54 = vld [vmem:[%s4697_s17 + $0x8] sm:$0xff] }
0x1942   : > { %3840 = vmatpush3.msra.mxu0 %v3521_v38  ;;  %v3336_v38 = vld [vmem:[%s4697_s17 + $0x18] sm:$0xff]  ;;  %v3335_v34 = vld [vmem:[%s4697_s17 + $0x10] sm:$0xff] }
0x1943   : > { %v4583_v28 = vadd.f32 %v3082_v25, %v3078_v27  ;;  %3841 = vmatprep.subr.mxu0 %v3957_v47 }
0x1944   : > { %3842 = vmatpush3.msra.mxu0 %v3520_v37 }
0x1945   : > { %v3084_v29 = vsel %vm714_vm0, %v4583_v28, 0.0  ;;  %3843 = vmatprep.subr.mxu0 %v3957_v47 }
0x1946   : > { %3085 = vadd.xlane.f32.xlu1 %v3084_v29  ;;  %3844 = vmatpush3.msra.mxu0 %v3519_v39 }
0x1947   : > { %3867 = vmatprep.subr.mxu0 %v3957_v47 }
0x19cf   : > { %v3086_v31 = vpop.xlane.xlu1 %3085 }
0x19d0   : > { %v3087_v32 = vmul.f32 0.03125, %v3086_v31 }
0x19d2   : > { %v3088_v33 = vsub.f32 %v4583_v28, %v3087_v32 }
0x19d4   : > { %v3089_v35 = vmul.f32 %v3088_v33, %v3088_v33 }
0x19d6   : > { %v3090_v36 = vsel %vm714_vm0, %v3089_v35, 0.0 }
0x19d7   : > { %3091 = vadd.xlane.f32.xlu1 %v3090_v36 }
0x1a60   : > { %v3092_v40 = vpop.xlane.xlu1 %3091 }
0x1a61   : > { %v3093_v41 = vmul.f32 0.03125, %v3092_v40 }
0x1a63   : > { %v3094_v42 = vadd.f32 1e-12, %v3093_v41 }
0x1a65   : > { %3941 = vrsqrt.f32 %v3094_v42  ;;  %v3533_v42 = vld [vmem:[%s4695_s15] ss:$0 sm:$0xff] }
0x1a72   : > { %v3942_v46 = vpop.eup %3941 }
0x1a73   : > { %v3096_v48 = vmul.f32 %v3942_v46, %v3088_v33  ;;  %v3534_v46 = vld [vmem:[%s4696_s16] ss:$0 sm:$0xff] }
0x1a75   : > { %v3101_v30 = vmul.f32 %v3100_v43, %v3096_v48 }
0x1a77   : > { %v3106_v49 = vadd.f32 %v3105_v56, %v3101_v30 }
0x1a79   : > { %3846 = vmatmul.mubr.msk.f32.vlgmr.msra.gmra.mxu0 %vm747_vm2, %v3106_v49 }
0x1a7a   : > { %3875 = vmatprep.mubr.msk.f32.mxu0 %vm3958_vm1, %v3957_v47  ;;  %3868 = vmatpush3.msra.mxu0 %v3336_v38 }
0x1a7b   : > { %3869 = vmatprep.subr.mxu0 %v3957_v47 }
0x1a7c   : > { %3870 = vmatpush3.msra.mxu0 %v3335_v34 }
0x1a7d   : > { %3871 = vmatprep.subr.mxu0 %v3957_v47 }
0x1a7e   : > { %3872 = vmatpush3.msra.mxu0 %v3334_v54 }
0x1a7f   : > { %3873 = vmatprep.subr.mxu0 %v3957_v47  ;;  %v3337_v47 = vld [vmem:[#allocation2] sm:$0x1] }
0x1b39   : > { %v3185_v62 = vpop.f32.mrf.mxu0 }
0x1b3a   : > { %v3186_v63 = vadd.f32 %v3185_v62, %v3115_v61 }
0x1b3b   : > { %v3847_v0 = vpop.f32.mrf.mxu0 }
0x1b3c   : > { %v3190_v3 = vmul.f32 0.70710677, %v3186_v63  ;;  %v3189_v20 = vmul.f32 0.5, %v3186_v63 }
0x1b3e   : > { %v3191_v55 = vand.u32 2147483647, %v3190_v3  ;;  %vm3211_vm9 = vcmp.ge.f32.partialorder %v3190_v3, 0.0 }
0x1b40   : > { %v3192_v6 = vmul.f32 0.3275911, %v3191_v55  ;;  %v3205_v58 = vsub.f32 0.0, %v3191_v55 }
0x1b42   : > { %v3193_v57 = vadd.f32 1.0, %v3192_v6  ;;  %v3206_v1 = vmul.f32 %v3205_v58, %v3191_v55 }
0x1b44   : > { %3943 = vrcp.f32 %v3193_v57  ;;  %v3207_v9 = vmul.f32 1.442695, %v3206_v1 }
0x1b46   : > { %3945 = vpow2.f32 %v3207_v9 }
0x1b51   : > { %v3944_v7 = vpop.eup %3943 }
0x1b52   : > { %v3196_v8 = vmul.f32 1.0614054, %v3944_v7 }
0x1b53   : > { %v3946_v16 = vpop.eup %3945 }
0x1b54   : > { %v3197_v10 = vadd.f32 -1.4531521, %v3196_v8 }
0x1b56   : > { %v3198_v11 = vmul.f32 %v3944_v7, %v3197_v10 }
0x1b58   : > { %v3199_v12 = vadd.f32 1.4214138, %v3198_v11 }
0x1b5a   : > { %v3200_v13 = vmul.f32 %v3944_v7, %v3199_v12 }
0x1b5c   : > { %v3201_v14 = vadd.f32 -0.28449672, %v3200_v13 }
0x1b5e   : > { %v3202_v2 = vmul.f32 %v3944_v7, %v3201_v14 }
0x1b60   : > { %v3203_v15 = vadd.f32 0.2548296, %v3202_v2 }
0x1b62   : > { %v3204_v5 = vmul.f32 %v3944_v7, %v3203_v15 }
0x1b64   : > { %v3209_v4 = vmul.f32 %v3946_v16, %v3204_v5 }
0x1b66   : > { %v3210_v17 = vsub.f32 1.0, %v3209_v4 }
0x1b68   : > { %v3212_v18 = vsub.f32 0.0, %v3210_v17 }
0x1b6a   : > { %v3213_v19 = vsel %vm3211_vm9, %v3210_v17, %v3212_v18 }
0x1b6b   : > { %v3214_v21 = vadd.f32 1.0, %v3213_v19 }
0x1b6d   : > { %v3215_v22 = vmul.f32 %v3214_v21, %v3189_v20 }
0x1b6f   : > { %3865 = vmatmul.mubr.msk.f32.vlgmr.msra.gmra.mxu1 %vm1931_vm8, %v3215_v22 }
0x1c2f   : > { %v3294_v25 = vpop.f32.mrf.mxu1 }
0x1c30   : > { %v3298_v26 = vadd.f32 %v3294_v25, %v4583_v28  ;;  %v3333_v28 = vld [vmem:[%s4697_s17] sm:$0xff] }
0x1c31   : > { %v3866_v27 = vpop.f32.mrf.mxu1  ;;  %3874 = vmatpush3.msra.mxu0 %v3333_v28 }
0x1c32   : > { %v3303_v29 = vadd.f32 %v3302_v23, %v3298_v26 }
0x1c34   : > { %v3306_v31 = vsel %vm714_vm0, %v3303_v29, 0.0 }
0x1c35   : > { %3307 = vadd.xlane.f32.xlu1 %v3306_v31 }
0x1cbe   : > { %v3308_v32 = vpop.xlane.xlu1 %3307 }
0x1cbf   : > { %v3309_v33 = vmul.f32 0.03125, %v3308_v32 }
0x1cc1   : > { %v3310_v35 = vsub.f32 %v3303_v29, %v3309_v33 }
0x1cc3   : > { %v3311_v36 = vmul.f32 %v3310_v35, %v3310_v35 }
0x1cc5   : > { %v3312_v24 = vsel %vm714_vm0, %v3311_v36, 0.0 }
0x1cc6   : > { %3313 = vadd.xlane.f32.xlu0 %v3312_v24 }
0x1d4f   : > { %v3314_v37 = vpop.xlane.xlu0 %3313 }
0x1d50   : > { %v3315_v39 = vmul.f32 0.03125, %v3314_v37 }
0x1d52   : > { %v3316_v40 = vadd.f32 1e-12, %v3315_v39 }
0x1d54   : > { %3947 = vrsqrt.f32 %v3316_v40 }
0x1d61   : > { %v3948_v41 = vpop.eup %3947 }
0x1d62   : > { %v3318_v43 = vmul.f32 %v3948_v41, %v3310_v35 }
0x1d64   : > { %v3325_v48 = vmul.f32 %v3533_v42, %v3318_v43 }
0x1d66   : > { %v3332_v56 = vadd.f32 %v3534_v46, %v3325_v48 }
0x1d68   : > { %3876 = vmatmul.mubr.msk.f32.vlgmr.msra.gmra.mxu0 %vm747_vm2, %v3332_v56 }
0x1e28   : > { %v3407_v30 = vpop.f32.mrf.mxu0 }
0x1e29   : > { %v3408_v49 = vadd.f32 %v3407_v30, %v3337_v47 }
0x1e2a   : > { %v3877_v50 = vpop.f32.mrf.mxu0 }
0x1e2b   : > { %3412 = vst.msk [vmem:[%s600_s30] sm:$0x1] %vm3411_vm10, %v3408_v49 }
0x1e2c PF: > { %s31_s20 = sadd.s32 1, %s3955_s20  }
0x1e2d   : > { %p28_p4 = scmp.ge.s32.totalorder %s31_s20, 4  }
0x1e2f   :  { %30 = sbr.rel (!%p28_p4) target bundleno = 5 (0x5), region = 130 }

</bundles_post_ra>
